<compile_context>
chip_gen: v7x
topology: tpu7x:2x2x1
jax: 0.10.0
libtpu: 0.0.40
codegen_flags: <defaults>
</compile_context>

<pallas_src>
import functools

import jax
import jax.numpy as jnp
import numpy as np
from jax.experimental import pallas as pl
from jax.experimental.pallas import tpu as pltpu

PADMAX = 2  # max 'same' padding in the net (K=5 conv -> pad 2)


# ----------------------------------------------------------------------------
# In-kernel helpers (traced inside the Pallas kernel body)
# ----------------------------------------------------------------------------
def _taps(a, k):
    """K shifted views of activation a (C, W) (per-sample padded segments along
    the lane axis).  Tap j: y[:, n] = a[:, n + (j - pad)], zero outside the
    buffer.  Static lane slices of a zero-extended buffer -- no MXU work."""
    c, w = a.shape
    pad = (k - 1) // 2
    z = jnp.zeros((c, PADMAX), a.dtype)
    aw = jnp.concatenate([z, a, z], axis=1)                  # (C, W + 2*PADMAX)
    return [aw[:, PADMAX - pad + j: PADMAX - pad + j + w] for j in range(k)]


def _inception_block(x, w_s1, w_s2, vec, mask, q):
    """One Inception block on the packed layout.

    x     : (Cin, W) activation, pad columns are zero.
    w_s1  : (4q, 3*Cin) bf16  -- branch1 conv1 / branch2 conv1 / branch3 conv3 /
                                 branch4 conv3 folded into one im2col matmul.
    w_s2  : (2q, 8q)   bf16  -- branch2 conv3 (3 taps of t2) + branch3 conv5
                                 (5 taps of t3) folded into one matmul.
    vec   : (4q, 6) f32 columns = [stage1 bias, mid BN scale, mid BN shift,
                                   stage2 bias (rows 0:2q), final BN scale,
                                   final BN shift]
    mask  : (1, W) f32, 1.0 at valid lanes, 0.0 at pad lanes.
    Returns (4q, W) f32 with pad columns zeroed.
    """
    xb = x.astype(jnp.bfloat16)
    # Shared im2col view of x: 3 taps stacked along channels (built once, used by
    # all four first-stage convs).
    x3 = jnp.concatenate(_taps(xb, 3), axis=0)                       # (3*Cin, W)
    s1 = jnp.dot(w_s1, x3, preferred_element_type=jnp.float32)       # (4q, W)
    s1 = s1 + vec[:, 0:1]                                            # stage-1 bias

    br1 = s1[0:q, :]                                                 # branch1 out
    br4 = s1[3 * q:4 * q, :]                                         # branch4 out
    # branch2/branch3 intermediate: BN -> ReLU -> mask pad lanes (they feed convs)
    tmid = jnp.maximum(s1[q:3 * q, :] * vec[q:3 * q, 1:2] + vec[q:3 * q, 2:3], 0.0)
    tmid = tmid * mask                                               # (2q, W)

    t2 = tmid[0:q, :].astype(jnp.bfloat16)
    t3 = tmid[q:2 * q, :].astype(jnp.bfloat16)
    xs2 = jnp.concatenate(_taps(t2, 3) + _taps(t3, 5), axis=0)       # (8q, W)
    s2 = jnp.dot(w_s2, xs2, preferred_element_type=jnp.float32)      # (2q, W)
    s2 = s2 + vec[0:2 * q, 3:4]                                      # stage-2 bias

    cat = jnp.concatenate([br1, s2[0:q, :], s2[q:2 * q, :], br4], axis=0)  # (4q, W)
    # final BatchNorm(co) + ReLU, then zero the pad lanes
    return jnp.maximum(cat * vec[:, 4:5] + vec[:, 5:6], 0.0) * mask


# ----------------------------------------------------------------------------
# Fused kernel: Inception x2 + MaxPool1d(L) + Linear/BN/ReLU/Linear
# ----------------------------------------------------------------------------
def fused_kernel(x_ref,
                 w1s1_ref, w1s2_ref, v1_ref,
                 w2s1_ref, w2s2_ref, v2_ref,
                 fw1_ref, fw2_ref, fvec_ref, fb2_ref,
                 out_ref, *, q, L, Lp, BT):
    wt = BT * Lp
    # validity mask over the packed lane axis (static, tiny VPU work)
    col = jax.lax.broadcasted_iota(jnp.int32, (1, wt), 1)
    valid = (col >= PADMAX) & (col < PADMAX + L)
    for b in range(1, BT):
        lo = b * Lp + PADMAX
        valid = valid | ((col >= lo) & (col < lo + L))
    mask = valid.astype(jnp.float32)

    x = x_ref[...]                                                   # (E, wt) bf16
    a1 = _inception_block(x, w1s1_ref[...], w1s2_ref[...], v1_ref[...], mask, q)
    a2 = _inception_block(a1, w2s1_ref[...], w2s2_ref[...], v2_ref[...], mask, q)

    # MaxPool1d(content_seq_len) per sample -> transposed feature matrix (Co, BT)
    cols = [jnp.max(a2[:, b * Lp + PADMAX: b * Lp + PADMAX + L], axis=1,
                    keepdims=True) for b in range(BT)]
    feat_t = jnp.concatenate(cols, axis=1)                           # (Co, BT) f32

    # fc: Linear -> BN -> ReLU -> Linear, computed in the transposed (feature, batch)
    # orientation so no in-kernel transpose is needed.
    fvec = fvec_ref[...]                                             # (H, 3)
    h = jnp.dot(fw1_ref[...], feat_t.astype(jnp.bfloat16),
                preferred_element_type=jnp.float32) + fvec[:, 0:1]   # (H, BT)
    h = jnp.maximum(h * fvec[:, 1:2] + fvec[:, 2:3], 0.0)
    out = jnp.dot(fw2_ref[...], h.astype(jnp.bfloat16),
                  preferred_element_type=jnp.float32) + fb2_ref[...]  # (Ccls, BT)
    out_ref[...] = out


_KCONST_KEYS = ('w1s1', 'w1s2', 'v1', 'w2s1', 'w2s2', 'v2',
                'fw1', 'fw2', 'fvec', 'fb2')


def fused_call(xw3, kp, *, q, L, Lp, BT):
    """xw3: (nb, Cin, BT*Lp) bf16, packed/padded input.  Returns (nb, Ccls, BT)."""
    nb, cin, wt = xw3.shape
    ccls = kp['fb2'].shape[0]
    consts = [kp[k] for k in _KCONST_KEYS]

    in_specs = [pl.BlockSpec((pl.Squeezed(), cin, wt), lambda i: (i, 0, 0))]
    for a in consts:
        in_specs.append(pl.BlockSpec(a.shape, lambda i, _n=a.ndim: (0,) * _n))

    kern = functools.partial(fused_kernel, q=q, L=L, Lp=Lp, BT=BT)
    return pl.pallas_call(
        kern,
        grid=(nb,),
        in_specs=in_specs,
        out_specs=pl.BlockSpec((pl.Squeezed(), ccls, BT), lambda i: (i, 0, 0)),
        out_shape=jax.ShapeDtypeStruct((nb, ccls, BT), jnp.float32),
        compiler_params=pltpu.CompilerParams(
            dimension_semantics=("parallel",)),
    )(xw3, *consts)


# ----------------------------------------------------------------------------
# Parameter construction (raw, PyTorch-layout) and packing for the kernel
# ----------------------------------------------------------------------------
def _conv_params(key, ci, co, k):
    kw, kb = jax.random.split(key)
    w = jax.random.normal(kw, (co, ci, k), jnp.float32) / np.sqrt(ci * k)
    b = jax.random.normal(kb, (co,), jnp.float32) * 0.05
    return w, b


def _bn_params(key, c):
    kg, kb = jax.random.split(key)
    gamma = 1.0 + 0.05 * jax.random.normal(kg, (c,), jnp.float32)
    beta = 0.02 * jax.random.normal(kb, (c,), jnp.float32)
    return gamma, beta, jnp.zeros((c,), jnp.float32), jnp.ones((c,), jnp.float32)


def _fold_bn(gamma, beta, rm, rv, eps=1e-5):
    s = gamma / jnp.sqrt(rv + eps)
    return s, beta - rm * s


def make_inception_raw(key, cin, co):
    q = co // 4
    ks = jax.random.split(key, 9)
    b1_w, b1_b = _conv_params(ks[0], cin, q, 1)
    b2_w1, b2_b1 = _conv_params(ks[1], cin, q, 1)
    b2_bn = _bn_params(ks[2], q)
    b2_w3, b2_b3 = _conv_params(ks[3], q, q, 3)
    b3_w1, b3_b1 = _conv_params(ks[4], cin, q, 3)
    b3_bn = _bn_params(ks[5], q)
    b3_w5, b3_b5 = _conv_params(ks[6], q, q, 5)
    b4_w, b4_b = _conv_params(ks[7], cin, q, 3)
    bn = _bn_params(ks[8], co)
    return dict(b1_w=b1_w, b1_b=b1_b,
                b2_w1=b2_w1, b2_b1=b2_b1, b2_bn=b2_bn, b2_w3=b2_w3, b2_b3=b2_b3,
                b3_w1=b3_w1, b3_b1=b3_b1, b3_bn=b3_bn, b3_w5=b3_w5, b3_b5=b3_b5,
                b4_w=b4_w, b4_b=b4_b, bn=bn)


def pack_inception(p, cin, q):
    """Fold the 4 branches into two im2col weight matrices + one constants table."""
    w_s1 = jnp.zeros((4 * q, 3 * cin), jnp.float32)
    # 1x1 convs (branch1, branch2.conv1) live in the middle tap's channel block
    w_s1 = w_s1.at[0:q, cin:2 * cin].set(p['b1_w'][:, :, 0])
    w_s1 = w_s1.at[q:2 * q, cin:2 * cin].set(p['b2_w1'][:, :, 0])
    for j in range(3):
        w_s1 = w_s1.at[2 * q:3 * q, j * cin:(j + 1) * cin].set(p['b3_w1'][:, :, j])
        w_s1 = w_s1.at[3 * q:4 * q, j * cin:(j + 1) * cin].set(p['b4_w'][:, :, j])
    bias_s1 = jnp.concatenate([p['b1_b'], p['b2_b1'], p['b3_b1'], p['b4_b']])

    w_s2 = jnp.zeros((2 * q, 8 * q), jnp.float32)
    for j in range(3):
        w_s2 = w_s2.at[0:q, j * q:(j + 1) * q].set(p['b2_w3'][:, :, j])
    for j in range(5):
        w_s2 = w_s2.at[q:2 * q, (3 + j) * q:(4 + j) * q].set(p['b3_w5'][:, :, j])
    bias_s2 = jnp.concatenate([p['b2_b3'], p['b3_b5']])

    s2m, sh2m = _fold_bn(*p['b2_bn'])
    s3m, sh3m = _fold_bn(*p['b3_bn'])
    mid_s = jnp.concatenate([jnp.ones((q,), jnp.float32), s2m, s3m,
                             jnp.ones((q,), jnp.float32)])
    mid_sh = jnp.concatenate([jnp.zeros((q,), jnp.float32), sh2m, sh3m,
                              jnp.zeros((q,), jnp.float32)])
    bn_s, bn_sh = _fold_bn(*p['bn'])
    vec = jnp.stack([bias_s1, mid_s, mid_sh,
                     jnp.concatenate([bias_s2, jnp.zeros((2 * q,), jnp.float32)]),
                     bn_s, bn_sh], axis=1)                           # (4q, 6)
    return w_s1.astype(jnp.bfloat16), w_s2.astype(jnp.bfloat16), vec


def pack_fc(fc):
    s, sh = _fold_bn(*fc['bn'])
    fvec = jnp.stack([fc['b1'], s, sh], axis=1)                      # (H, 3)
    return (fc['w1'].astype(jnp.bfloat16), fc['w2'].astype(jnp.bfloat16),
            fvec, fc['b2'].reshape(-1, 1).astype(jnp.float32))


def init_raw_params(key, vocab, E, D, H, C):
    k_emb, k_i1, k_i2, k_fc = jax.random.split(key, 4)
    k1, k2, k3, k4, k5 = jax.random.split(k_fc, 5)
    fc = dict(w1=jax.random.normal(k1, (H, D), jnp.float32) * 0.1,
              b1=jax.random.normal(k2, (H,), jnp.float32) * 0.05,
              bn=_bn_params(k3, H),
              w2=jax.random.normal(k4, (C, H), jnp.float32) * 0.1,
              b2=jax.random.normal(k5, (C,), jnp.float32) * 0.05)
    return dict(embedding=jax.random.normal(k_emb, (vocab, E), jnp.float32) * 0.1,
                inc1=make_inception_raw(k_i1, E, D),
                inc2=make_inception_raw(k_i2, D, D),
                fc=fc)


def pack_params(raw):
    E = raw['inc1']['b1_w'].shape[1]
    D = raw['inc2']['b1_w'].shape[1]
    q = raw['inc1']['b1_w'].shape[0]
    assert 4 * q == D and q % 8 == 0
    w1s1, w1s2, v1 = pack_inception(raw['inc1'], E, q)
    w2s1, w2s2, v2 = pack_inception(raw['inc2'], D, q)
    fw1, fw2, fvec, fb2 = pack_fc(raw['fc'])
    return dict(embedding=raw['embedding'],
                kernel=dict(w1s1=w1s1, w1s2=w1s2, v1=v1,
                            w2s1=w2s1, w2s2=w2s2, v2=v2,
                            fw1=fw1, fw2=fw2, fvec=fvec, fb2=fb2))


# ----------------------------------------------------------------------------
# Full forward
# ----------------------------------------------------------------------------
@jax.jit
def model_forward(texts, params):
    # nn.Embedding lookup is a gather -- kept as plain-JAX glue outside the kernel.
    emb = params['embedding'][texts]                  # (B, L, E) f32
    B, L, E = emb.shape
    q = params['kernel']['v1'].shape[0] // 4
    Lp = L + 2 * PADMAX
    # Batch tile: samples packed into the lane axis per grid step.  For the small
    # demo the whole batch fits one step; for large B choose BT up to ~8-32 (keeps
    # tiles lane-dense and, with >=2 grid steps, megacore-shardable on v7x).
    BT = B
    nb = B // BT

    # permute(0,2,1) + per-sample zero padding + pack batch into the lane axis:
    # (B, L, E) -> (nb, E, BT*Lp), bf16.  Pure layout plumbing; XLA fuses it with
    # the gather.
    x = jnp.transpose(emb, (0, 2, 1))                                # (B, E, L)
    xp = jnp.pad(x, ((0, 0), (0, 0), (PADMAX, PADMAX)))              # (B, E, Lp)
    xw3 = (xp.reshape(nb, BT, E, Lp).transpose(0, 2, 1, 3)
             .reshape(nb, E, BT * Lp).astype(jnp.bfloat16))

    out3 = fused_call(xw3, params['kernel'], q=q, L=L, Lp=Lp, BT=BT)  # (nb,Ccls,BT)
    ccls = out3.shape[1]
    return out3.transpose(0, 2, 1).reshape(B, ccls)                  # (B, Ccls)


# ----------------------------------------------------------------------------
# Pure-JAX reference (different code path) for verification
# ----------------------------------------------------------------------------
def _conv1d_ref(x, w, b):           # x (B, Ci, L) f32, w (Co, Ci, K), b (Co,)
    K = w.shape[-1]
    pad = (K - 1) // 2
    L = x.shape[-1]
    xp = jnp.pad(x, ((0, 0), (0, 0), (pad, pad))).astype(jnp.bfloat16)
    wb = w.astype(jnp.bfloat16)
    out = jnp.zeros((x.shape[0], w.shape[0], L), jnp.float32)
    for j in range(K):
        out = out + jnp.einsum('oc,bcl->bol', wb[:, :, j], xp[:, :, j:j + L],
                               preferred_element_type=jnp.float32)
    return out + b[None, :, None]


def _bn_ref(x, gamma, beta, rm, rv, eps=1e-5):       # x (B, C, L), eval-mode BN
    s = gamma / jnp.sqrt(rv + eps)
    return x * s[None, :, None] + (beta - rm * s)[None, :, None]


def _inception_ref(x, p):
    relu = jax.nn.relu
    br1 = _conv1d_ref(x, p['b1_w'], p['b1_b'])
    t = relu(_bn_ref(_conv1d_ref(x, p['b2_w1'], p['b2_b1']), *p['b2_bn']))
    br2 = _conv1d_ref(t, p['b2_w3'], p['b2_b3'])
    t = relu(_bn_ref(_conv1d_ref(x, p['b3_w1'], p['b3_b1']), *p['b3_bn']))
    br3 = _conv1d_ref(t, p['b3_w5'], p['b3_b5'])
    br4 = _conv1d_ref(x, p['b4_w'], p['b4_b'])
    cat = jnp.concatenate([br1, br2, br3, br4], axis=1)
    return relu(_bn_ref(cat, *p['bn']))


def reference_forward(texts, raw):
    emb = raw['embedding'][texts]
    x = jnp.transpose(emb, (0, 2, 1))
    x = _inception_ref(x, raw['inc1'])
    x = _inception_ref(x, raw['inc2'])
    feat = jnp.max(x, axis=2)                                        # (B, D)
    fc = raw['fc']
    h = jnp.dot(feat.astype(jnp.bfloat16), fc['w1'].astype(jnp.bfloat16).T,
                preferred_element_type=jnp.float32) + fc['b1'][None]
    s, sh = _fold_bn(*fc['bn'])
    h = jax.nn.relu(h * s[None] + sh[None])
    return jnp.dot(h.astype(jnp.bfloat16), fc['w2'].astype(jnp.bfloat16).T,
                   preferred_element_type=jnp.float32) + fc['b2'][None]


# ----------------------------------------------------------------------------
if __name__ == "__main__":
    # opt: vocab_size=100, embedding_dim=32, content_seq_len=16,
    #      inception_dim=64, linear_hidden_size=64, num_classes=10
    B, L = 2, 16
    vocab, E, D, H, C = 100, 32, 64, 64, 10

    key = jax.random.PRNGKey(0)
    k_params, k_texts = jax.random.split(key)
    raw = init_raw_params(k_params, vocab, E, D, H, C)
    params = pack_params(raw)
    texts = jax.random.randint(k_texts, (B, L), 0, vocab, dtype=jnp.int32)

    out = jax.block_until_ready(model_forward(texts, params))
    ref = jax.block_until_ready(reference_forward(texts, raw))

    assert out.shape == (B, C), out.shape
    # bf16 MXU operands (f32 accumulation) on both paths -> slightly loosened tol.
    assert jnp.allclose(out, ref, atol=2e-3, rtol=2e-3), (out, ref)
    print("KERNEL_OK")
</pallas_src>

<mosaic_0001>
module attributes {stable_mosaic.version = 11 : i64} {
  func.func @fused_kernel(%arg0: i32, %arg1: memref<1x32x40xbf16, #tpu.memory_space<vmem>>, %arg2: memref<64x96xbf16, #tpu.memory_space<vmem>>, %arg3: memref<32x128xbf16, #tpu.memory_space<vmem>>, %arg4: memref<64x6xf32, #tpu.memory_space<vmem>>, %arg5: memref<64x192xbf16, #tpu.memory_space<vmem>>, %arg6: memref<32x128xbf16, #tpu.memory_space<vmem>>, %arg7: memref<64x6xf32, #tpu.memory_space<vmem>>, %arg8: memref<64x64xbf16, #tpu.memory_space<vmem>>, %arg9: memref<10x64xbf16, #tpu.memory_space<vmem>>, %arg10: memref<64x3xf32, #tpu.memory_space<vmem>>, %arg11: memref<10x1xf32, #tpu.memory_space<vmem>>, %arg12: memref<1x10x2xf32, #tpu.memory_space<vmem>>) attributes {dimension_semantics = [#tpu.dimension_semantics<parallel>], iteration_bounds = array<i64: 1>, scalar_prefetch = 0 : i64, scratch_operands = 0 : i64, tpu.core_type = #tpu.core_type<tc>, window_params = [{transform_indices = @transform_0, window_bounds = array<i64: 1, 32, 40>}, {pipeline_mode = #tpu.pipeline_mode<synchronous>, transform_indices = @transform_1, window_bounds = array<i64: 64, 96>}, {pipeline_mode = #tpu.pipeline_mode<synchronous>, transform_indices = @transform_2, window_bounds = array<i64: 32, 128>}, {pipeline_mode = #tpu.pipeline_mode<synchronous>, transform_indices = @transform_3, window_bounds = array<i64: 64, 6>}, {pipeline_mode = #tpu.pipeline_mode<synchronous>, transform_indices = @transform_4, window_bounds = array<i64: 64, 192>}, {pipeline_mode = #tpu.pipeline_mode<synchronous>, transform_indices = @transform_5, window_bounds = array<i64: 32, 128>}, {pipeline_mode = #tpu.pipeline_mode<synchronous>, transform_indices = @transform_6, window_bounds = array<i64: 64, 6>}, {pipeline_mode = #tpu.pipeline_mode<synchronous>, transform_indices = @transform_7, window_bounds = array<i64: 64, 64>}, {pipeline_mode = #tpu.pipeline_mode<synchronous>, transform_indices = @transform_8, window_bounds = array<i64: 10, 64>}, {pipeline_mode = #tpu.pipeline_mode<synchronous>, transform_indices = @transform_9, window_bounds = array<i64: 64, 3>}, {pipeline_mode = #tpu.pipeline_mode<synchronous>, transform_indices = @transform_10, window_bounds = array<i64: 10, 1>}, {transform_indices = @transform_11, window_bounds = array<i64: 1, 10, 2>}]} {
    %0 = tpu.iota {dimensions = array<i32: 1>} : vector<1x40xi32>
    %c2_i32 = arith.constant 2 : i32
    %1 = vector.broadcast %c2_i32 : i32 to vector<1x40xi32>
    %2 = arith.cmpi sge, %0, %1 : vector<1x40xi32>
    %c18_i32 = arith.constant 18 : i32
    %3 = vector.broadcast %c18_i32 : i32 to vector<1x40xi32>
    %4 = arith.cmpi slt, %0, %3 : vector<1x40xi32>
    %5 = arith.andi %2, %4 : vector<1x40xi1>
    %c22_i32 = arith.constant 22 : i32
    %6 = vector.broadcast %c22_i32 : i32 to vector<1x40xi32>
    %7 = arith.cmpi sge, %0, %6 : vector<1x40xi32>
    %c38_i32 = arith.constant 38 : i32
    %8 = vector.broadcast %c38_i32 : i32 to vector<1x40xi32>
    %9 = arith.cmpi slt, %0, %8 : vector<1x40xi32>
    %10 = arith.andi %7, %9 : vector<1x40xi1>
    %11 = arith.ori %5, %10 : vector<1x40xi1>
    %12 = arith.extui %11 : vector<1x40xi1> to vector<1x40xi32>
    %13 = arith.sitofp %12 : vector<1x40xi32> to vector<1x40xf32>
    %c0 = arith.constant 0 : index
    %c0_0 = arith.constant 0 : index
    %c0_1 = arith.constant 0 : index
    %14 = vector.load %arg1[%c0, %c0_0, %c0_1] : memref<1x32x40xbf16, #tpu.memory_space<vmem>>, vector<1x32x40xbf16>
    %15 = vector.shape_cast %14 : vector<1x32x40xbf16> to vector<32x40xbf16>
    %c0_2 = arith.constant 0 : index
    %c0_3 = arith.constant 0 : index
    %16 = vector.load %arg2[%c0_2, %c0_3] : memref<64x96xbf16, #tpu.memory_space<vmem>>, vector<64x96xbf16>
    %c0_4 = arith.constant 0 : index
    %c0_5 = arith.constant 0 : index
    %17 = vector.load %arg3[%c0_4, %c0_5] : memref<32x128xbf16, #tpu.memory_space<vmem>>, vector<32x128xbf16>
    %c0_6 = arith.constant 0 : index
    %c0_7 = arith.constant 0 : index
    %18 = vector.load %arg4[%c0_6, %c0_7] : memref<64x6xf32, #tpu.memory_space<vmem>>, vector<64x6xf32>
    %cst = arith.constant 0.000000e+00 : bf16
    %19 = vector.broadcast %cst : bf16 to vector<32x2xbf16>
    %20 = tpu.concatenate %19, %15, %19 in 1 : vector<32x2xbf16>, vector<32x40xbf16>, vector<32x2xbf16> -> vector<32x44xbf16>
    %21 = vector.extract_strided_slice %20 {offsets = [0, 1], sizes = [32, 40], strides = [1, 1]} : vector<32x44xbf16> to vector<32x40xbf16>
    %22 = vector.extract_strided_slice %20 {offsets = [0, 2], sizes = [32, 40], strides = [1, 1]} : vector<32x44xbf16> to vector<32x40xbf16>
    %23 = vector.extract_strided_slice %20 {offsets = [0, 3], sizes = [32, 40], strides = [1, 1]} : vector<32x44xbf16> to vector<32x40xbf16>
    %24 = tpu.concatenate %21, %22, %23 in 0 : vector<32x40xbf16>, vector<32x40xbf16>, vector<32x40xbf16> -> vector<96x40xbf16>
    %cst_8 = arith.constant dense<0.000000e+00> : vector<64x40xf32>
    %25 = tpu.matmul %16, %24, %cst_8 {dimension_numbers = #tpu.dot_dimension_numbers<[1], [0], [0], [1], [0, 0, 1, 1], [], []>} : vector<64x96xbf16>, vector<96x40xbf16>, vector<64x40xf32> -> vector<64x40xf32>
    %26 = vector.extract_strided_slice %18 {offsets = [0, 0], sizes = [64, 1], strides = [1, 1]} : vector<64x6xf32> to vector<64x1xf32>
    %27 = vector.broadcast %26 : vector<64x1xf32> to vector<64x40xf32>
    %28 = arith.addf %25, %27 : vector<64x40xf32>
    %29 = vector.extract_strided_slice %28 {offsets = [0, 0], sizes = [16, 40], strides = [1, 1]} : vector<64x40xf32> to vector<16x40xf32>
    %30 = vector.extract_strided_slice %28 {offsets = [48, 0], sizes = [16, 40], strides = [1, 1]} : vector<64x40xf32> to vector<16x40xf32>
    %31 = vector.extract_strided_slice %28 {offsets = [16, 0], sizes = [32, 40], strides = [1, 1]} : vector<64x40xf32> to vector<32x40xf32>
    %32 = vector.extract_strided_slice %18 {offsets = [16, 1], sizes = [32, 1], strides = [1, 1]} : vector<64x6xf32> to vector<32x1xf32>
    %33 = vector.broadcast %32 : vector<32x1xf32> to vector<32x40xf32>
    %34 = arith.mulf %31, %33 : vector<32x40xf32>
    %35 = vector.extract_strided_slice %18 {offsets = [16, 2], sizes = [32, 1], strides = [1, 1]} : vector<64x6xf32> to vector<32x1xf32>
    %36 = vector.broadcast %35 : vector<32x1xf32> to vector<32x40xf32>
    %37 = arith.addf %34, %36 : vector<32x40xf32>
    %cst_9 = arith.constant 0.000000e+00 : f32
    %38 = vector.broadcast %cst_9 : f32 to vector<32x40xf32>
    %39 = arith.maximumf %37, %38 : vector<32x40xf32>
    %40 = vector.broadcast %13 : vector<1x40xf32> to vector<32x40xf32>
    %41 = arith.mulf %39, %40 : vector<32x40xf32>
    %42 = vector.extract_strided_slice %41 {offsets = [0, 0], sizes = [16, 40], strides = [1, 1]} : vector<32x40xf32> to vector<16x40xf32>
    %43 = arith.truncf %42 : vector<16x40xf32> to vector<16x40xbf16>
    %44 = vector.extract_strided_slice %41 {offsets = [16, 0], sizes = [16, 40], strides = [1, 1]} : vector<32x40xf32> to vector<16x40xf32>
    %45 = arith.truncf %44 : vector<16x40xf32> to vector<16x40xbf16>
    %cst_10 = arith.constant 0.000000e+00 : bf16
    %46 = vector.broadcast %cst_10 : bf16 to vector<16x2xbf16>
    %47 = tpu.concatenate %46, %43, %46 in 1 : vector<16x2xbf16>, vector<16x40xbf16>, vector<16x2xbf16> -> vector<16x44xbf16>
    %48 = vector.extract_strided_slice %47 {offsets = [0, 1], sizes = [16, 40], strides = [1, 1]} : vector<16x44xbf16> to vector<16x40xbf16>
    %49 = vector.extract_strided_slice %47 {offsets = [0, 2], sizes = [16, 40], strides = [1, 1]} : vector<16x44xbf16> to vector<16x40xbf16>
    %50 = vector.extract_strided_slice %47 {offsets = [0, 3], sizes = [16, 40], strides = [1, 1]} : vector<16x44xbf16> to vector<16x40xbf16>
    %cst_11 = arith.constant 0.000000e+00 : bf16
    %51 = vector.broadcast %cst_11 : bf16 to vector<16x2xbf16>
    %52 = tpu.concatenate %51, %45, %51 in 1 : vector<16x2xbf16>, vector<16x40xbf16>, vector<16x2xbf16> -> vector<16x44xbf16>
    %53 = vector.extract_strided_slice %52 {offsets = [0, 0], sizes = [16, 40], strides = [1, 1]} : vector<16x44xbf16> to vector<16x40xbf16>
    %54 = vector.extract_strided_slice %52 {offsets = [0, 1], sizes = [16, 40], strides = [1, 1]} : vector<16x44xbf16> to vector<16x40xbf16>
    %55 = vector.extract_strided_slice %52 {offsets = [0, 2], sizes = [16, 40], strides = [1, 1]} : vector<16x44xbf16> to vector<16x40xbf16>
    %56 = vector.extract_strided_slice %52 {offsets = [0, 3], sizes = [16, 40], strides = [1, 1]} : vector<16x44xbf16> to vector<16x40xbf16>
    %57 = vector.extract_strided_slice %52 {offsets = [0, 4], sizes = [16, 40], strides = [1, 1]} : vector<16x44xbf16> to vector<16x40xbf16>
    %58 = tpu.concatenate %48, %49, %50, %53, %54, %55, %56, %57 in 0 : vector<16x40xbf16>, vector<16x40xbf16>, vector<16x40xbf16>, vector<16x40xbf16>, vector<16x40xbf16>, vector<16x40xbf16>, vector<16x40xbf16>, vector<16x40xbf16> -> vector<128x40xbf16>
    %cst_12 = arith.constant dense<0.000000e+00> : vector<32x40xf32>
    %59 = tpu.matmul %17, %58, %cst_12 {dimension_numbers = #tpu.dot_dimension_numbers<[1], [0], [0], [1], [0, 0, 1, 1], [], []>} : vector<32x128xbf16>, vector<128x40xbf16>, vector<32x40xf32> -> vector<32x40xf32>
    %60 = vector.extract_strided_slice %18 {offsets = [0, 3], sizes = [32, 1], strides = [1, 1]} : vector<64x6xf32> to vector<32x1xf32>
    %61 = vector.broadcast %60 : vector<32x1xf32> to vector<32x40xf32>
    %62 = arith.addf %59, %61 : vector<32x40xf32>
    %63 = vector.extract_strided_slice %62 {offsets = [0, 0], sizes = [16, 40], strides = [1, 1]} : vector<32x40xf32> to vector<16x40xf32>
    %64 = vector.extract_strided_slice %62 {offsets = [16, 0], sizes = [16, 40], strides = [1, 1]} : vector<32x40xf32> to vector<16x40xf32>
    %65 = tpu.concatenate %29, %63, %64, %30 in 0 : vector<16x40xf32>, vector<16x40xf32>, vector<16x40xf32>, vector<16x40xf32> -> vector<64x40xf32>
    %66 = vector.extract_strided_slice %18 {offsets = [0, 4], sizes = [64, 1], strides = [1, 1]} : vector<64x6xf32> to vector<64x1xf32>
    %67 = vector.broadcast %66 : vector<64x1xf32> to vector<64x40xf32>
    %68 = arith.mulf %65, %67 : vector<64x40xf32>
    %69 = vector.extract_strided_slice %18 {offsets = [0, 5], sizes = [64, 1], strides = [1, 1]} : vector<64x6xf32> to vector<64x1xf32>
    %70 = vector.broadcast %69 : vector<64x1xf32> to vector<64x40xf32>
    %71 = arith.addf %68, %70 : vector<64x40xf32>
    %cst_13 = arith.constant 0.000000e+00 : f32
    %72 = vector.broadcast %cst_13 : f32 to vector<64x40xf32>
    %73 = arith.maximumf %71, %72 : vector<64x40xf32>
    %74 = vector.broadcast %13 : vector<1x40xf32> to vector<64x40xf32>
    %75 = arith.mulf %73, %74 : vector<64x40xf32>
    %c0_14 = arith.constant 0 : index
    %c0_15 = arith.constant 0 : index
    %76 = vector.load %arg5[%c0_14, %c0_15] : memref<64x192xbf16, #tpu.memory_space<vmem>>, vector<64x192xbf16>
    %c0_16 = arith.constant 0 : index
    %c0_17 = arith.constant 0 : index
    %77 = vector.load %arg6[%c0_16, %c0_17] : memref<32x128xbf16, #tpu.memory_space<vmem>>, vector<32x128xbf16>
    %c0_18 = arith.constant 0 : index
    %c0_19 = arith.constant 0 : index
    %78 = vector.load %arg7[%c0_18, %c0_19] : memref<64x6xf32, #tpu.memory_space<vmem>>, vector<64x6xf32>
    %79 = arith.truncf %75 : vector<64x40xf32> to vector<64x40xbf16>
    %cst_20 = arith.constant 0.000000e+00 : bf16
    %80 = vector.broadcast %cst_20 : bf16 to vector<64x2xbf16>
    %81 = tpu.concatenate %80, %79, %80 in 1 : vector<64x2xbf16>, vector<64x40xbf16>, vector<64x2xbf16> -> vector<64x44xbf16>
    %82 = vector.extract_strided_slice %81 {offsets = [0, 1], sizes = [64, 40], strides = [1, 1]} : vector<64x44xbf16> to vector<64x40xbf16>
    %83 = vector.extract_strided_slice %81 {offsets = [0, 2], sizes = [64, 40], strides = [1, 1]} : vector<64x44xbf16> to vector<64x40xbf16>
    %84 = vector.extract_strided_slice %81 {offsets = [0, 3], sizes = [64, 40], strides = [1, 1]} : vector<64x44xbf16> to vector<64x40xbf16>
    %85 = tpu.concatenate %82, %83, %84 in 0 : vector<64x40xbf16>, vector<64x40xbf16>, vector<64x40xbf16> -> vector<192x40xbf16>
    %cst_21 = arith.constant dense<0.000000e+00> : vector<64x40xf32>
    %86 = tpu.matmul %76, %85, %cst_21 {dimension_numbers = #tpu.dot_dimension_numbers<[1], [0], [0], [1], [0, 0, 1, 1], [], []>} : vector<64x192xbf16>, vector<192x40xbf16>, vector<64x40xf32> -> vector<64x40xf32>
    %87 = vector.extract_strided_slice %78 {offsets = [0, 0], sizes = [64, 1], strides = [1, 1]} : vector<64x6xf32> to vector<64x1xf32>
    %88 = vector.broadcast %87 : vector<64x1xf32> to vector<64x40xf32>
    %89 = arith.addf %86, %88 : vector<64x40xf32>
    %90 = vector.extract_strided_slice %89 {offsets = [0, 0], sizes = [16, 40], strides = [1, 1]} : vector<64x40xf32> to vector<16x40xf32>
    %91 = vector.extract_strided_slice %89 {offsets = [48, 0], sizes = [16, 40], strides = [1, 1]} : vector<64x40xf32> to vector<16x40xf32>
    %92 = vector.extract_strided_slice %89 {offsets = [16, 0], sizes = [32, 40], strides = [1, 1]} : vector<64x40xf32> to vector<32x40xf32>
    %93 = vector.extract_strided_slice %78 {offsets = [16, 1], sizes = [32, 1], strides = [1, 1]} : vector<64x6xf32> to vector<32x1xf32>
    %94 = vector.broadcast %93 : vector<32x1xf32> to vector<32x40xf32>
    %95 = arith.mulf %92, %94 : vector<32x40xf32>
    %96 = vector.extract_strided_slice %78 {offsets = [16, 2], sizes = [32, 1], strides = [1, 1]} : vector<64x6xf32> to vector<32x1xf32>
    %97 = vector.broadcast %96 : vector<32x1xf32> to vector<32x40xf32>
    %98 = arith.addf %95, %97 : vector<32x40xf32>
    %cst_22 = arith.constant 0.000000e+00 : f32
    %99 = vector.broadcast %cst_22 : f32 to vector<32x40xf32>
    %100 = arith.maximumf %98, %99 : vector<32x40xf32>
    %101 = vector.broadcast %13 : vector<1x40xf32> to vector<32x40xf32>
    %102 = arith.mulf %100, %101 : vector<32x40xf32>
    %103 = vector.extract_strided_slice %102 {offsets = [0, 0], sizes = [16, 40], strides = [1, 1]} : vector<32x40xf32> to vector<16x40xf32>
    %104 = arith.truncf %103 : vector<16x40xf32> to vector<16x40xbf16>
    %105 = vector.extract_strided_slice %102 {offsets = [16, 0], sizes = [16, 40], strides = [1, 1]} : vector<32x40xf32> to vector<16x40xf32>
    %106 = arith.truncf %105 : vector<16x40xf32> to vector<16x40xbf16>
    %cst_23 = arith.constant 0.000000e+00 : bf16
    %107 = vector.broadcast %cst_23 : bf16 to vector<16x2xbf16>
    %108 = tpu.concatenate %107, %104, %107 in 1 : vector<16x2xbf16>, vector<16x40xbf16>, vector<16x2xbf16> -> vector<16x44xbf16>
    %109 = vector.extract_strided_slice %108 {offsets = [0, 1], sizes = [16, 40], strides = [1, 1]} : vector<16x44xbf16> to vector<16x40xbf16>
    %110 = vector.extract_strided_slice %108 {offsets = [0, 2], sizes = [16, 40], strides = [1, 1]} : vector<16x44xbf16> to vector<16x40xbf16>
    %111 = vector.extract_strided_slice %108 {offsets = [0, 3], sizes = [16, 40], strides = [1, 1]} : vector<16x44xbf16> to vector<16x40xbf16>
    %cst_24 = arith.constant 0.000000e+00 : bf16
    %112 = vector.broadcast %cst_24 : bf16 to vector<16x2xbf16>
    %113 = tpu.concatenate %112, %106, %112 in 1 : vector<16x2xbf16>, vector<16x40xbf16>, vector<16x2xbf16> -> vector<16x44xbf16>
    %114 = vector.extract_strided_slice %113 {offsets = [0, 0], sizes = [16, 40], strides = [1, 1]} : vector<16x44xbf16> to vector<16x40xbf16>
    %115 = vector.extract_strided_slice %113 {offsets = [0, 1], sizes = [16, 40], strides = [1, 1]} : vector<16x44xbf16> to vector<16x40xbf16>
    %116 = vector.extract_strided_slice %113 {offsets = [0, 2], sizes = [16, 40], strides = [1, 1]} : vector<16x44xbf16> to vector<16x40xbf16>
    %117 = vector.extract_strided_slice %113 {offsets = [0, 3], sizes = [16, 40], strides = [1, 1]} : vector<16x44xbf16> to vector<16x40xbf16>
    %118 = vector.extract_strided_slice %113 {offsets = [0, 4], sizes = [16, 40], strides = [1, 1]} : vector<16x44xbf16> to vector<16x40xbf16>
    %119 = tpu.concatenate %109, %110, %111, %114, %115, %116, %117, %118 in 0 : vector<16x40xbf16>, vector<16x40xbf16>, vector<16x40xbf16>, vector<16x40xbf16>, vector<16x40xbf16>, vector<16x40xbf16>, vector<16x40xbf16>, vector<16x40xbf16> -> vector<128x40xbf16>
    %cst_25 = arith.constant dense<0.000000e+00> : vector<32x40xf32>
    %120 = tpu.matmul %77, %119, %cst_25 {dimension_numbers = #tpu.dot_dimension_numbers<[1], [0], [0], [1], [0, 0, 1, 1], [], []>} : vector<32x128xbf16>, vector<128x40xbf16>, vector<32x40xf32> -> vector<32x40xf32>
    %121 = vector.extract_strided_slice %78 {offsets = [0, 3], sizes = [32, 1], strides = [1, 1]} : vector<64x6xf32> to vector<32x1xf32>
    %122 = vector.broadcast %121 : vector<32x1xf32> to vector<32x40xf32>
    %123 = arith.addf %120, %122 : vector<32x40xf32>
    %124 = vector.extract_strided_slice %123 {offsets = [0, 0], sizes = [16, 40], strides = [1, 1]} : vector<32x40xf32> to vector<16x40xf32>
    %125 = vector.extract_strided_slice %123 {offsets = [16, 0], sizes = [16, 40], strides = [1, 1]} : vector<32x40xf32> to vector<16x40xf32>
    %126 = tpu.concatenate %90, %124, %125, %91 in 0 : vector<16x40xf32>, vector<16x40xf32>, vector<16x40xf32>, vector<16x40xf32> -> vector<64x40xf32>
    %127 = vector.extract_strided_slice %78 {offsets = [0, 4], sizes = [64, 1], strides = [1, 1]} : vector<64x6xf32> to vector<64x1xf32>
    %128 = vector.broadcast %127 : vector<64x1xf32> to vector<64x40xf32>
    %129 = arith.mulf %126, %128 : vector<64x40xf32>
    %130 = vector.extract_strided_slice %78 {offsets = [0, 5], sizes = [64, 1], strides = [1, 1]} : vector<64x6xf32> to vector<64x1xf32>
    %131 = vector.broadcast %130 : vector<64x1xf32> to vector<64x40xf32>
    %132 = arith.addf %129, %131 : vector<64x40xf32>
    %cst_26 = arith.constant 0.000000e+00 : f32
    %133 = vector.broadcast %cst_26 : f32 to vector<64x40xf32>
    %134 = arith.maximumf %132, %133 : vector<64x40xf32>
    %135 = vector.broadcast %13 : vector<1x40xf32> to vector<64x40xf32>
    %136 = arith.mulf %134, %135 : vector<64x40xf32>
    %137 = vector.extract_strided_slice %136 {offsets = [0, 2], sizes = [64, 16], strides = [1, 1]} : vector<64x40xf32> to vector<64x16xf32>
    %cst_27 = arith.constant dense<0xFF800000> : vector<64xf32>
    %138 = vector.multi_reduction <maximumf>, %137, %cst_27 [1] : vector<64x16xf32> to vector<64xf32>
    %139 = vector.shape_cast %138 : vector<64xf32> to vector<64x1xf32>
    %140 = vector.extract_strided_slice %136 {offsets = [0, 22], sizes = [64, 16], strides = [1, 1]} : vector<64x40xf32> to vector<64x16xf32>
    %cst_28 = arith.constant dense<0xFF800000> : vector<64xf32>
    %141 = vector.multi_reduction <maximumf>, %140, %cst_28 [1] : vector<64x16xf32> to vector<64xf32>
    %142 = vector.shape_cast %141 : vector<64xf32> to vector<64x1xf32>
    %143 = tpu.concatenate %139, %142 in 1 : vector<64x1xf32>, vector<64x1xf32> -> vector<64x2xf32>
    %c0_29 = arith.constant 0 : index
    %c0_30 = arith.constant 0 : index
    %144 = vector.load %arg10[%c0_29, %c0_30] : memref<64x3xf32, #tpu.memory_space<vmem>>, vector<64x3xf32>
    %c0_31 = arith.constant 0 : index
    %c0_32 = arith.constant 0 : index
    %145 = vector.load %arg8[%c0_31, %c0_32] : memref<64x64xbf16, #tpu.memory_space<vmem>>, vector<64x64xbf16>
    %146 = arith.truncf %143 : vector<64x2xf32> to vector<64x2xbf16>
    %cst_33 = arith.constant dense<0.000000e+00> : vector<64x2xf32>
    %147 = tpu.matmul %145, %146, %cst_33 {dimension_numbers = #tpu.dot_dimension_numbers<[1], [0], [0], [1], [0, 0, 1, 1], [], []>} : vector<64x64xbf16>, vector<64x2xbf16>, vector<64x2xf32> -> vector<64x2xf32>
    %148 = vector.extract_strided_slice %144 {offsets = [0, 0], sizes = [64, 1], strides = [1, 1]} : vector<64x3xf32> to vector<64x1xf32>
    %149 = vector.broadcast %148 : vector<64x1xf32> to vector<64x2xf32>
    %150 = arith.addf %147, %149 : vector<64x2xf32>
    %151 = vector.extract_strided_slice %144 {offsets = [0, 1], sizes = [64, 1], strides = [1, 1]} : vector<64x3xf32> to vector<64x1xf32>
    %152 = vector.broadcast %151 : vector<64x1xf32> to vector<64x2xf32>
    %153 = arith.mulf %150, %152 : vector<64x2xf32>
    %154 = vector.extract_strided_slice %144 {offsets = [0, 2], sizes = [64, 1], strides = [1, 1]} : vector<64x3xf32> to vector<64x1xf32>
    %155 = vector.broadcast %154 : vector<64x1xf32> to vector<64x2xf32>
    %156 = arith.addf %153, %155 : vector<64x2xf32>
    %cst_34 = arith.constant 0.000000e+00 : f32
    %157 = vector.broadcast %cst_34 : f32 to vector<64x2xf32>
    %158 = arith.maximumf %156, %157 : vector<64x2xf32>
    %c0_35 = arith.constant 0 : index
    %c0_36 = arith.constant 0 : index
    %159 = vector.load %arg9[%c0_35, %c0_36] : memref<10x64xbf16, #tpu.memory_space<vmem>>, vector<10x64xbf16>
    %160 = arith.truncf %158 : vector<64x2xf32> to vector<64x2xbf16>
    %cst_37 = arith.constant dense<0.000000e+00> : vector<10x2xf32>
    %161 = tpu.matmul %159, %160, %cst_37 {dimension_numbers = #tpu.dot_dimension_numbers<[1], [0], [0], [1], [0, 0, 1, 1], [], []>} : vector<10x64xbf16>, vector<64x2xbf16>, vector<10x2xf32> -> vector<10x2xf32>
    %c0_38 = arith.constant 0 : index
    %c0_39 = arith.constant 0 : index
    %162 = vector.load %arg11[%c0_38, %c0_39] : memref<10x1xf32, #tpu.memory_space<vmem>>, vector<10x1xf32>
    %163 = vector.broadcast %162 : vector<10x1xf32> to vector<10x2xf32>
    %164 = arith.addf %161, %163 : vector<10x2xf32>
    %c0_40 = arith.constant 0 : index
    %c0_41 = arith.constant 0 : index
    %c0_42 = arith.constant 0 : index
    %165 = vector.load %arg12[%c0_40, %c0_41, %c0_42] : memref<1x10x2xf32, #tpu.memory_space<vmem>>, vector<1x10x2xf32>
    %166 = vector.shape_cast %165 : vector<1x10x2xf32> to vector<10x2xf32>
    %167 = vector.shape_cast %164 : vector<10x2xf32> to vector<1x10x2xf32>
    tpu.vector_store %arg12[%c0_40, %c0_41, %c0_42], %167 {strides = array<i32>} : memref<1x10x2xf32, #tpu.memory_space<vmem>>, vector<1x10x2xf32>,
    return
  }
  func.func @transform_0(%arg0: i32) -> (i32, i32, i32) {
    %c0_i32 = arith.constant 0 : i32
    %c0_i32_0 = arith.constant 0 : i32
    %c0_i32_1 = arith.constant 0 : i32
    return %arg0, %c0_i32, %c0_i32_0 : i32, i32, i32
  }
  func.func @transform_1(%arg0: i32) -> (i32, i32) {
    %c0_i32 = arith.constant 0 : i32
    %c0_i32_0 = arith.constant 0 : i32
    %c0_i32_1 = arith.constant 0 : i32
    return %c0_i32, %c0_i32_0 : i32, i32
  }
  func.func @transform_2(%arg0: i32) -> (i32, i32) {
    %c0_i32 = arith.constant 0 : i32
    %c0_i32_0 = arith.constant 0 : i32
    %c0_i32_1 = arith.constant 0 : i32
    return %c0_i32, %c0_i32_0 : i32, i32
  }
  func.func @transform_3(%arg0: i32) -> (i32, i32) {
    %c0_i32 = arith.constant 0 : i32
    %c0_i32_0 = arith.constant 0 : i32
    %c0_i32_1 = arith.constant 0 : i32
    return %c0_i32, %c0_i32_0 : i32, i32
  }
  func.func @transform_4(%arg0: i32) -> (i32, i32) {
    %c0_i32 = arith.constant 0 : i32
    %c0_i32_0 = arith.constant 0 : i32
    %c0_i32_1 = arith.constant 0 : i32
    return %c0_i32, %c0_i32_0 : i32, i32
  }
  func.func @transform_5(%arg0: i32) -> (i32, i32) {
    %c0_i32 = arith.constant 0 : i32
    %c0_i32_0 = arith.constant 0 : i32
    %c0_i32_1 = arith.constant 0 : i32
    return %c0_i32, %c0_i32_0 : i32, i32
  }
  func.func @transform_6(%arg0: i32) -> (i32, i32) {
    %c0_i32 = arith.constant 0 : i32
    %c0_i32_0 = arith.constant 0 : i32
    %c0_i32_1 = arith.constant 0 : i32
    return %c0_i32, %c0_i32_0 : i32, i32
  }
  func.func @transform_7(%arg0: i32) -> (i32, i32) {
    %c0_i32 = arith.constant 0 : i32
    %c0_i32_0 = arith.constant 0 : i32
    %c0_i32_1 = arith.constant 0 : i32
    return %c0_i32, %c0_i32_0 : i32, i32
  }
  func.func @transform_8(%arg0: i32) -> (i32, i32) {
    %c0_i32 = arith.constant 0 : i32
    %c0_i32_0 = arith.constant 0 : i32
    %c0_i32_1 = arith.constant 0 : i32
    return %c0_i32, %c0_i32_0 : i32, i32
  }
  func.func @transform_9(%arg0: i32) -> (i32, i32) {
    %c0_i32 = arith.constant 0 : i32
    %c0_i32_0 = arith.constant 0 : i32
    %c0_i32_1 = arith.constant 0 : i32
    return %c0_i32, %c0_i32_0 : i32, i32
  }
  func.func @transform_10(%arg0: i32) -> (i32, i32) {
    %c0_i32 = arith.constant 0 : i32
    %c0_i32_0 = arith.constant 0 : i32
    %c0_i32_1 = arith.constant 0 : i32
    return %c0_i32, %c0_i32_0 : i32, i32
  }
  func.func @transform_11(%arg0: i32) -> (i32, i32, i32) {
    %c0_i32 = arith.constant 0 : i32
    %c0_i32_0 = arith.constant 0 : i32
    %c0_i32_1 = arith.constant 0 : i32
    return %arg0, %c0_i32, %c0_i32_0 : i32, i32, i32
  }
}

</mosaic_0001>

<bundles_post_ra>
// kernel: model_forward.1
= control target key start
LH: loop header
LB: loop body
LE: loop exit
PB: predicated region body
PF: predicated region fallthrough
CT: control target
= control target key end

     0   :  { %s1698_s19 = smov 2   ;;  %vm88_vm0 = vcmask 15360   ;;  %vm94_vm1 = vcmask 343040   ;;  %s1699_s22 = smov 126   ;;  %vm181_vm2 = vcmask 785408   ;;  %v1701_v13 = vmov 0   ;;  %s2246_s0 = inlined_call_operand.vmem [shape: bf16[1,32,40], index: 0, kind: input, shape index: {}]   ;;  %s2247_s1 = inlined_call_operand.vmem [shape: bf16[64,96], index: 1, kind: input, shape index: {}]   ;;  %s2248_s3 = inlined_call_operand.vmem [shape: f32[64,6], index: 3, kind: input, shape index: {}]   ;;  %s2249_s2 = inlined_call_operand.vmem [shape: bf16[32,128], index: 2, kind: input, shape index: {}]   ;;  %s2250_s4 = inlined_call_operand.vmem [shape: bf16[64,192], index: 4, kind: input, shape index: {}]   ;;  %s2251_s6 = inlined_call_operand.vmem [shape: f32[64,6], index: 6, kind: input, shape index: {}]   ;;  %s2252_s5 = inlined_call_operand.vmem [shape: bf16[32,128], index: 5, kind: input, shape index: {}]   ;;  %s2253_s7 = inlined_call_operand.vmem [shape: bf16[64,64], index: 7, kind: input, shape index: {}]   ;;  %s2254_s9 = inlined_call_operand.vmem [shape: f32[64,3], index: 9, kind: input, shape index: {}]   ;;  %s2255_s8 = inlined_call_operand.vmem [shape: bf16[10,64], index: 8, kind: input, shape index: {}]   ;;  %s2256_s10 = inlined_call_operand.vmem [shape: f32[10,1], index: 10, kind: input, shape index: {}]   ;;  %s2257_s11 = inlined_call_operand.vmem [shape: f32[1,10,2], index: 11, kind: output, shape index: {}]  }
   0x1   :  { %v1671_v0 = vld [vmem:[%s2246_s0] sm:$0xff]   ;;  %v1672_v1 = vld [vmem:[%s2246_s0 + $0x8] sm:$0xff]   ;;  %s1700_s23 = smov 127   ;;  %1606 = vset.pattern.permute.xlu1 %v1701_v13  ;;  %v1799_v14 = vld [vmem:[%s2248_s3 + $0x18] sm:$0xff]  ;;  %v1702_v15 = vmov 1   ;;  %v1703_v18 = vmov 2   ;;  %v39_v30 = vlaneseq }
   0x2   :  { %84 = vrot.lane.b32.xlu0 %v1671_v0, %s1698_s19  ;;  %v1673_v9 = vld [vmem:[%s2247_s1] sm:$0xff]   ;;  %v1807_v16 = vld [vmem:[%s2248_s3 + $0x10] sm:$0xff]  ;;  %v1824_v19 = vld [vmem:[%s2248_s3 + $0x28] sm:$0xff]  ;;  %v1704_v51 = vmov 0.0   ;;  %s1706_s21 = smov 125   ;;  %vm700_vm10 = vcmask 523264  }
   0x3   :  { %1517 = vmatprep.mubr.msk.bf16.mxu0 %vm181_vm2, %v1673_v9  ;;  %1608 = vset.pattern.permute.xlu0 %v1702_v15  ;;  %v1816_v17 = vld [vmem:[%s2248_s3 + $0x20] sm:$0xff]  ;;  %v1674_v24 = vld [vmem:[%s2247_s1 + $0x8] sm:$0xff]   ;;  %v1675_v25 = vld [vmem:[%s2247_s1 + $0x10] sm:$0xff]   ;;  %v40_v33 = vand.u32 127, %v39_v30  ;;  %vm1047_vm11 = vcmask 146448   ;;  %vm1072_vm12 = vcmask 310448  }
   0x4   :  { %v1676_v26 = vld [vmem:[%s2247_s1 + $0x18] sm:$0xff]   ;;  %s1705_s1 = smov 1   ;;  %v66_v30 = vld [vmem:[%s2248_s3] sm:$0xff]  ;;  %vm1097_vm13 = vcmask 7168   ;;  %vm1710_vm14 = vmmov 0   ;;  %vm1419_vm15 = vcmask 9216  }
   0x5   :  { %vm41_vm3 = vcmp.ge.s32.totalorder %v40_v33, 2  ;;  %vm42_vm4 = vcmp.lt.s32.totalorder %v40_v33, 18  ;;  %vm44_vm5 = vcmp.ge.s32.totalorder %v40_v33, 22  ;;  %vm45_vm6 = vcmp.lt.s32.totalorder %v40_v33, 38 }
   0x6   :  { %86 = vrot.lane.b32.xlu0 %v1672_v1, %s1698_s19  ;;  %vm1853_vm7 = vmand %vm41_vm3, %vm42_vm4  ;;  %v1708_v33 = vmov 5  }
   0x7   :  { %vm46_vm8 = vmand %vm44_vm5, %vm45_vm6 }
   0x8   :  { %vm47_vm9 = vmor %vm1853_vm7, %vm46_vm8 }
   0x9   :  { %v1864_v52 = vsel %vm47_vm9, 1.0, %v1704_v51 }
  0x74   :  { %v85_v2 = vpop.permute.xlu0 %84 }
  0x75   :  { %v91_v3 = vsel %vm88_vm0, 0, %v85_v2 }
  0x76   :  { %v95_v4 = vsel %vm94_vm1, %v91_v3, 0 }
  0x77   :  { %103 = vrot.lane.b32.xlu0 %v95_v4, %s1699_s22  ;;  %99 = vrot.lane.b32.xlu1 %v95_v4, %s1700_s23 }
  0x78   :  { %v87_v5 = vpop.permute.xlu0 %86 }
  0x79   :  { %v93_v6 = vsel %vm88_vm0, 0, %v87_v5 }
  0x7a   :  { %v96_v7 = vsel %vm94_vm1, %v93_v6, 0 }
  0x7b   :  { %101 = vrot.lane.b32.xlu1 %v96_v7, %s1700_s23 }
  0x7f   :  { %105 = vrot.lane.b32.xlu1 %v96_v7, %s1699_s22 }
  0xe9   :  { %v100_v8 = vpop.permute.xlu1 %99  ;;  %v104_v11 = vpop.permute.xlu0 %103 }
  0xea   :  { %1505 = vmatprep.subr.bf16.mxu0 %v100_v8  ;;  %167 = vrot.lane.b32.xlu0 %v100_v8, %s1700_s23 }
  0xeb   :  { %1506 = vmatpush3.bf16.msra.mxu0 %v100_v8 }
  0xed   :  { %v102_v10 = vpop.permute.xlu1 %101 }
  0xee   :  { %1507 = vmatprep.subr.bf16.mxu0 %v102_v10  ;;  %169 = vrot.lane.b32.xlu1 %v102_v10, %s1700_s23 }
  0xef   :  { %171 = vrot.lane.b32.xlu0 %v104_v11, %s1700_s23  ;;  %1508 = vmatpush3.bf16.msra.mxu0 %v102_v10 }
  0xf1   :  { %v106_v12 = vpop.permute.xlu1 %105 }
  0xf2   :  { %173 = vrot.lane.b32.xlu1 %v106_v12, %s1700_s23 }
  0xf3   :  { %264 = vperm.xlu0 %1608, %v1799_v14  }
  0xf6   :  { %124 = vperm.xlu1 %1606, %v1799_v14  }
  0xf7   :  { %1609 = vset.pattern.permute.xlu0 %v1701_v13 }
  0xf8   :  { %119 = vperm.xlu0 %1609, %v1807_v16  }
  0xfa   :  { %1607 = vset.pattern.permute.xlu1 %v1702_v15 }
  0xfb   :  { %260 = vperm.xlu1 %1607, %v1807_v16  }
  0xfc   :  { %129 = vperm.xlu0 %1609, %v1816_v17  }
  0xff   :  { %1610 = vset.pattern.permute.xlu1 %v1703_v18 }
 0x100   :  { %280 = vperm.xlu1 %1610, %v1807_v16   ;;  %1613 = vset.pattern.permute.xlu0 %v1702_v15 }
 0x101   :  { %272 = vperm.xlu0 %1613, %v1824_v19  }
 0x104   :  { %284 = vperm.xlu1 %1610, %v1799_v14  }
 0x105   :  { %1615 = vset.pattern.permute.xlu0 %v1701_v13 }
 0x108   :  { %1611 = vset.pattern.permute.xlu1 %v1701_v13 }
 0x109   :  { %134 = vperm.xlu1 %1611, %v1824_v19  }
 0x10d   :  { %1612 = vset.pattern.permute.xlu1 %v1702_v15 }
 0x10e   :  { %268 = vperm.xlu1 %1612, %v1816_v17  }
 0x112   :  { %1614 = vset.pattern.permute.xlu1 %v1703_v18 }
 0x113   :  { %288 = vperm.xlu1 %1614, %v1816_v17  }
 0x117   :  { %292 = vperm.xlu1 %1614, %v1824_v19  }
 0x11b   :  { %1616 = vset.pattern.permute.xlu1 %v1701_v13 }
 0x15c   :  { %v168_v20 = vpop.permute.xlu0 %167 }
 0x15d   :  { %1509 = vmatprep.subr.bf16.mxu0 %v168_v20 }
 0x15e   :  { %1510 = vmatpush3.bf16.msra.mxu0 %v168_v20 }
 0x160   :  { %v170_v21 = vpop.permute.xlu1 %169 }
 0x161   :  { %1511 = vmatprep.subr.bf16.mxu0 %v170_v21  ;;  %v172_v22 = vpop.permute.xlu0 %171 }
 0x162   :  { %1512 = vmatpush3.bf16.msra.mxu0 %v170_v21 }
 0x163   :  { %1513 = vmatprep.subr.bf16.mxu0 %v172_v22 }
 0x164   :  { %v174_v23 = vpop.permute.xlu1 %173 }
 0x166   :  { %1514 = vmatpush3.bf16.msra.mxu0 %v172_v22 }
 0x167   :  { %1515 = vmatprep.subr.bf16.mxu0 %v174_v23 }
 0x16a   :  { %1516 = vmatpush3.bf16.msra.mxu0 %v174_v23 }
 0x16b   :  { %713 = vmatprep.subr.bf16.mxu0 %v1701_v13 }
 0x16d   :  { %1518 = vmatmul.mubr.msk.bf16.vlgmr.msra.gmra.mrb[0].mxu0 %vm181_vm2, %v1674_v24 }
 0x16e   :  { %1521 = vmatprep.mubr.msk.bf16.mxu0 %vm181_vm2, %v1675_v25 }
 0x172   :  { %v265_v31 = vpop.permute.xlu0 %264 }
 0x175   :  { %1522 = vmatmul.mubr.msk.bf16.gmra.mrb[4].mxu0 %vm181_vm2, %v1676_v26  ;;  %v125_v27 = vpop.permute.xlu1 %124 }
 0x177   :  { %v120_v35 = vpop.permute.xlu0 %119 }
 0x17a   :  { %v261_v28 = vpop.permute.xlu1 %260 }
 0x17b   :  { %v130_v49 = vpop.permute.xlu0 %129 }
 0x17f   :  { %v281_v29 = vpop.permute.xlu1 %280 }
 0x180   :  { %v273_v59 = vpop.permute.xlu0 %272 }
 0x183   :  { %v285_v32 = vpop.permute.xlu1 %284 }
 0x188   :  { %v135_v34 = vpop.permute.xlu1 %134 }
 0x18d   :  { %v269_v43 = vpop.permute.xlu1 %268 }
 0x192   :  { %v289_v54 = vpop.permute.xlu1 %288 }
 0x196   :  { %v293_v3 = vpop.permute.xlu1 %292 }
 0x240   :  { %v1519_v36 = vpop.f32.mrb[0].mxu0 }
 0x241   :  { %v237_v37 = vadd.f32 %v1519_v36, %v120_v35  ;;  %v1851_v38 = vpop.f32.mrb[1].mxu0  ;;  %v73_v35 = vld [vmem:[%s2248_s3 + $0x38] sm:$0xff] }
 0x242   :  { %v1520_v40 = vpop.f32.mrb[2].mxu0 }
 0x243   :  { %v275_v41 = vmul.f32 %v261_v28, %v237_v37  ;;  %v240_v42 = vadd.f32 %v1520_v40, %v125_v27  ;;  %v1857_v44 = vpop.f32.mrb[3].mxu0  ;;  %v1678_v40 = vld [vmem:[%s2249_s2 + $0x8] sm:$0xff]  }
 0x245   :  { %v295_v45 = vadd.f32 %v281_v29, %v275_v41  ;;  %v276_v46 = vmul.f32 %v265_v31, %v240_v42  ;;  %v67_v29 = vld [vmem:[%s2248_s3 + $0x8] sm:$0xff]  ;;  %v1677_v31 = vld [vmem:[%s2249_s2] sm:$0xff]  }
 0x246   :  { %1541 = vmatprep.mubr.bf16.mxu1 %v1677_v31 }
 0x247   :  { %v299_v47 = vmax.f32 %v295_v45, 0.0  ;;  %v296_v48 = vadd.f32 %v285_v32, %v276_v46  ;;  %v1707_v32 = vmov 4  }
 0x248   :  { %v1861_v50 = vpop.f32.mrb[4].mxu0 }
 0x249   :  { %v300_v53 = vmax.f32 %v296_v48, 0.0  ;;  %v244_v55 = vpop.f32.mrb[5].mxu0  ;;  %v303_v60 = vmul.f32 %v1864_v52, %v299_v47 }
 0x24a   :  { %v245_v56 = vadd.f32 %v244_v55, %v130_v49  ;;  %v1866_v57 = vpop.f32.mrb[6].mxu0 }
 0x24b   :  { %v247_v58 = vpop.f32.mrb[7].mxu0  ;;  %v304_v61 = vmul.f32 %v1864_v52, %v300_v53 }
 0x24c   :  { %v277_v62 = vmul.f32 %v269_v43, %v245_v56  ;;  %v248_v63 = vadd.f32 %v247_v58, %v135_v34  ;;  %v1709_v34 = vmov 3  }
 0x24d   :  { %v307_v0 = vpack.c.bf16 %v304_v61, %v303_v60 }
 0x24e   :  { %v297_v1 = vadd.f32 %v289_v54, %v277_v62  ;;  %v278_v2 = vmul.f32 %v273_v59, %v248_v63 }
 0x24f   :  { %310 = vrot.lane.b32.xlu0 %v307_v0, %s1698_s19 }
 0x250   :  { %v301_v4 = vmax.f32 %v297_v1, 0.0  ;;  %v298_v5 = vadd.f32 %v293_v3, %v278_v2 }
 0x252   :  { %v302_v6 = vmax.f32 %v298_v5, 0.0  ;;  %v305_v7 = vmul.f32 %v1864_v52, %v301_v4 }
 0x254   :  { %v306_v8 = vmul.f32 %v1864_v52, %v302_v6 }
 0x256   :  { %v308_v9 = vpack.c.bf16 %v306_v8, %v305_v7 }
 0x258   :  { %316 = vrot.lane.b32.xlu1 %v308_v9, %s1698_s19 }
 0x2c1   :  { %v311_v10 = vpop.permute.xlu0 %310 }
 0x2c2   :  { %v313_v11 = vsel %vm88_vm0, 0, %v311_v10 }
 0x2c3   :  { %v314_v12 = vsel %vm94_vm1, %v313_v11, 0 }
 0x2c4   :  { %324 = vrot.lane.b32.xlu1 %v314_v12, %s1699_s22  ;;  %322 = vrot.lane.b32.xlu0 %v314_v12, %s1700_s23 }
 0x2ca   :  { %v317_v20 = vpop.permute.xlu1 %316 }
 0x2cb   :  { %v319_v21 = vsel %vm88_vm0, 0, %v317_v20 }
 0x2cc   :  { %v320_v22 = vsel %vm94_vm1, %v319_v21, 0 }
 0x2cd   :  { %329 = vrot.lane.b32.xlu1 %v320_v22, %s1700_s23  ;;  %327 = vrot.lane.b32.xlu0 %v320_v22, %s1705_s1 }
 0x2d1   :  { %333 = vrot.lane.b32.xlu1 %v320_v22, %s1706_s21  ;;  %331 = vrot.lane.b32.xlu0 %v320_v22, %s1699_s22 }
 0x336   :  { %v325_v23 = vpop.permute.xlu1 %324  ;;  %v323_v24 = vpop.permute.xlu0 %322 }
 0x337   :  { %365 = vrot.lane.b32.xlu1 %v325_v23, %s1700_s23  ;;  %1525 = vmatprep.subr.bf16.mxu1 %v323_v24 }
 0x338   :  { %363 = vrot.lane.b32.xlu0 %v323_v24, %s1700_s23  ;;  %1526 = vmatpush3.bf16.msra.mxu1 %v323_v24 }
 0x33f   :  { %v1886_v25 = vpop.permute.xlu1 %329  ;;  %v328_v26 = vpop.permute.xlu0 %327 }
 0x340   :  { %369 = vrot.lane.b32.xlu1 %v1886_v25, %s1700_s23  ;;  %367 = vrot.lane.b32.xlu0 %v328_v26, %s1700_s23 }
 0x343   :  { %v334_v27 = vpop.permute.xlu1 %333  ;;  %v332_v28 = vpop.permute.xlu0 %331 }
 0x344   :  { %373 = vrot.lane.b32.xlu1 %v334_v27, %s1700_s23  ;;  %371 = vrot.lane.b32.xlu0 %v332_v28, %s1700_s23 }
 0x348   :  { %114 = vperm.xlu1 %1616, %v67_v29   ;;  %109 = vperm.xlu0 %1615, %v66_v30  }
 0x34c   :  { %1617 = vset.pattern.permute.xlu1 %v1707_v32  ;;  %1619 = vset.pattern.permute.xlu0 %v1708_v33 }
 0x34d   :  { %433 = vperm.xlu1 %1617, %v66_v30   ;;  %473 = vperm.xlu0 %1619, %v66_v30  }
 0x351   :  { %1618 = vset.pattern.permute.xlu1 %v1709_v34  ;;  %481 = vperm.xlu0 %1619, %v1807_v16  }
 0x352   :  { %336 = vperm.xlu1 %1618, %v66_v30  }
 0x355   :  { %489 = vperm.xlu0 %1619, %v1816_v17  }
 0x356   :  { %340 = vperm.xlu1 %1618, %v67_v29  }
 0x359   :  { %1626 = vset.pattern.permute.xlu0 %v1707_v32 }
 0x35a   :  { %1620 = vset.pattern.permute.xlu1 %v1708_v33  ;;  %437 = vperm.xlu0 %1626, %v67_v29  }
 0x35b   :  { %477 = vperm.xlu1 %1620, %v67_v29  }
 0x35e   :  { %445 = vperm.xlu0 %1626, %v1799_v14  }
 0x35f   :  { %1621 = vset.pattern.permute.xlu1 %v1707_v32 }
 0x360   :  { %441 = vperm.xlu1 %1621, %v1807_v16  }
 0x362   :  { %453 = vperm.xlu0 %1626, %v1824_v19  }
 0x364   :  { %1622 = vset.pattern.permute.xlu1 %v1709_v34 }
 0x365   :  { %344 = vperm.xlu1 %1622, %v1807_v16   ;;  %v72_v16 = vld [vmem:[%s2248_s3 + $0x30] sm:$0xff] }
 0x366   :  { %461 = vperm.xlu0 %1626, %v73_v35  }
 0x369   :  { %348 = vperm.xlu1 %1622, %v1799_v14  }
 0x36a   :  { %1632 = vset.pattern.permute.xlu0 %v1702_v15 }
 0x36d   :  { %1623 = vset.pattern.permute.xlu1 %v1708_v33 }
 0x36e   :  { %485 = vperm.xlu1 %1623, %v1799_v14  }
 0x372   :  { %1624 = vset.pattern.permute.xlu1 %v1707_v32 }
 0x373   :  { %449 = vperm.xlu1 %1624, %v1816_v17  }
 0x377   :  { %1625 = vset.pattern.permute.xlu1 %v1701_v13 }
 0x378   :  { %139 = vperm.xlu1 %1625, %v72_v16  }
 0x37c   :  { %144 = vperm.xlu1 %1625, %v73_v35  }
 0x380   :  { %1627 = vset.pattern.permute.xlu1 %v1708_v33 }
 0x381   :  { %493 = vperm.xlu1 %1627, %v1824_v19  }
 0x385   :  { %1628 = vset.pattern.permute.xlu1 %v1707_v32 }
 0x386   :  { %457 = vperm.xlu1 %1628, %v72_v16  }
 0x38a   :  { %1629 = vset.pattern.permute.xlu1 %v1708_v33 }
 0x38b   :  { %497 = vperm.xlu1 %1629, %v72_v16  }
 0x38f   :  { %501 = vperm.xlu1 %1629, %v73_v35  }
 0x393   :  { %1630 = vset.pattern.permute.xlu1 %v1701_v13 }
 0x3a9   :  { %v366_v17 = vpop.permute.xlu1 %365 }
 0x3aa   :  { %v364_v14 = vpop.permute.xlu0 %363 }
 0x3ab   :  { %1527 = vmatprep.subr.bf16.mxu1 %v364_v14 }
 0x3ac   :  { %1528 = vmatpush3.bf16.msra.mxu1 %v364_v14 }
 0x3ad   :  { %1529 = vmatprep.subr.bf16.mxu1 %v366_v17 }
 0x3b0   :  { %1530 = vmatpush3.bf16.msra.mxu1 %v366_v17 }
 0x3b2   :  { %v368_v36 = vpop.permute.xlu0 %367  ;;  %v370_v19 = vpop.permute.xlu1 %369 }
 0x3b3   :  { %1531 = vmatprep.subr.bf16.mxu1 %v368_v36 }
 0x3b4   :  { %1532 = vmatpush3.bf16.msra.mxu1 %v368_v36 }
 0x3b5   :  { %1533 = vmatprep.subr.bf16.mxu1 %v1886_v25 }
 0x3b6   :  { %v372_v37 = vpop.permute.xlu0 %371  ;;  %v374_v39 = vpop.permute.xlu1 %373 }
 0x3b8   :  { %1534 = vmatpush3.bf16.msra.mxu1 %v1886_v25 }
 0x3b9   :  { %1535 = vmatprep.subr.bf16.mxu1 %v370_v19 }
 0x3bc   :  { %1536 = vmatpush3.bf16.msra.mxu1 %v370_v19 }
 0x3bd   :  { %1537 = vmatprep.subr.bf16.mxu1 %v372_v37 }
 0x3c0   :  { %1538 = vmatpush3.bf16.msra.mxu1 %v372_v37 }
 0x3c1   :  { %1539 = vmatprep.subr.bf16.mxu1 %v374_v39 }
 0x3c4   :  { %1540 = vmatpush3.bf16.msra.mxu1 %v374_v39 }
 0x3c7   :  { %v115_v41 = vpop.permute.xlu1 %114  ;;  %1542 = vmatmul.mubr.bf16.vlgmr.msra.gmra.mrb[0].mxu1 %v1678_v40  ;;  %v110_v42 = vpop.permute.xlu0 %109 }
 0x3c8   :  { %v229_v48 = vadd.f32 %v1851_v38, %v110_v42  ;;  %v232_v55 = vadd.f32 %v1857_v44, %v115_v41 }
 0x3cc   :  { %v474_v43 = vpop.permute.xlu0 %473  ;;  %v434_v45 = vpop.permute.xlu1 %433 }
 0x3cd   :  { %v464_v49 = vmul.f32 %v434_v45, %v229_v48 }
 0x3cf   :  { %v504_v56 = vadd.f32 %v474_v43, %v464_v49 }
 0x3d0   :  { %v482_v46 = vpop.permute.xlu0 %481 }
 0x3d1   :  { %v337_v47 = vpop.permute.xlu1 %336  ;;  %v512_v61 = vmax.f32 %v504_v56, 0.0 }
 0x3d3   :  { %v520_v1 = vmul.f32 %v1864_v52, %v512_v61 }
 0x3d4   :  { %v490_v53 = vpop.permute.xlu0 %489 }
 0x3d5   :  { %v341_v54 = vpop.permute.xlu1 %340 }
 0x3d9   :  { %v438_v58 = vpop.permute.xlu0 %437 }
 0x3da   :  { %v465_v59 = vmul.f32 %v438_v58, %v232_v55  ;;  %v478_v60 = vpop.permute.xlu1 %477 }
 0x3dc   :  { %v505_v62 = vadd.f32 %v478_v60, %v465_v59 }
 0x3dd   :  { %v446_v8 = vpop.permute.xlu0 %445 }
 0x3de   :  { %v513_v63 = vmax.f32 %v505_v62, 0.0 }
 0x3df   :  { %v442_v0 = vpop.permute.xlu1 %441 }
 0x3e0   :  { %v521_v2 = vmul.f32 %v1864_v52, %v513_v63 }
 0x3e1   :  { %v454_v10 = vpop.permute.xlu0 %453 }
 0x3e2   :  { %v548_v3 = vpack.c.bf16 %v521_v2, %v520_v1 }
 0x3e4   :  { %556 = vrot.lane.b32.xlu0 %v548_v3, %s1698_s19  ;;  %v345_v38 = vpop.permute.xlu1 %344 }
 0x3e5   :  { %v462_v22 = vpop.permute.xlu0 %461 }
 0x3e8   :  { %v349_v4 = vpop.permute.xlu1 %348 }
 0x3ed   :  { %v486_v5 = vpop.permute.xlu1 %485 }
 0x3f2   :  { %v450_v6 = vpop.permute.xlu1 %449 }
 0x3f7   :  { %v140_v44 = vpop.permute.xlu1 %139 }
 0x3f8   :  { %v253_v12 = vadd.f32 %v1861_v50, %v140_v44 }
 0x3fb   :  { %v145_v7 = vpop.permute.xlu1 %144 }
 0x3fc   :  { %v256_v20 = vadd.f32 %v1866_v57, %v145_v7 }
 0x3fe   :  { %v471_v25 = vmul.f32 %v462_v22, %v256_v20 }
 0x400   :  { %v494_v9 = vpop.permute.xlu1 %493 }
 0x405   :  { %v458_v11 = vpop.permute.xlu1 %457 }
 0x406   :  { %v470_v21 = vmul.f32 %v458_v11, %v253_v12 }
 0x40a   :  { %v498_v23 = vpop.permute.xlu1 %497 }
 0x40b   :  { %v510_v24 = vadd.f32 %v498_v23, %v470_v21 }
 0x40d   :  { %v518_v27 = vmax.f32 %v510_v24, 0.0  ;;  %v1681_v24 = vld [vmem:[%s2250_s4 + $0x4] ss:$8 sps:$4 sm:$0xff]  }
 0x40e   :  { %v502_v26 = vpop.permute.xlu1 %501  ;;  %1446 = vmatprep.mubr.msk.bf16.mxu0 %vm700_vm10, %v1681_v24 }
 0x40f   :  { %v511_v28 = vadd.f32 %v502_v26, %v471_v25  ;;  %v526_v30 = vmul.f32 %v1864_v52, %v518_v27  ;;  %v1990_v25 = vld [vmem:[%s2251_s6 + $0x18] sm:$0xff]  ;;  %v1997_v26 = vld [vmem:[%s2251_s6 + $0x10] sm:$0xff]  ;;  %v2006_v27 = vld [vmem:[%s2251_s6 + $0x20] sm:$0xff] }
 0x411   :  { %v519_v29 = vmax.f32 %v511_v28, 0.0  ;;  %v2014_v28 = vld [vmem:[%s2251_s6 + $0x28] sm:$0xff] }
 0x413   :  { %v527_v31 = vmul.f32 %v1864_v52, %v519_v29 }
 0x415   :  { %v551_v35 = vpack.c.bf16 %v527_v31, %v526_v30 }
 0x456   :  { %v557_v61 = vpop.permute.xlu0 %556 }
 0x49a   :  { %v1543_v16 = vpop.f32.mrb[0].mxu1 }
 0x49b   :  { %v426_v14 = vadd.f32 %v1543_v16, %v345_v38  ;;  %v417_v17 = vpop.f32.mrb[1].mxu1 }
 0x49c   :  { %v418_v50 = vadd.f32 %v417_v17, %v337_v47  ;;  %v1544_v36 = vpop.f32.mrb[2].mxu1 }
 0x49d   :  { %v468_v57 = vmul.f32 %v450_v6, %v426_v14  ;;  %v429_v19 = vadd.f32 %v1544_v36, %v349_v4  ;;  %v420_v37 = vpop.f32.mrb[3].mxu1  ;;  %v1682_v36 = vld [vmem:[%s2250_s4 + $0x14] ss:$8 sps:$4 sm:$0xff]  }
 0x49e   :  { %v466_v39 = vmul.f32 %v442_v0, %v418_v50  ;;  %v421_v40 = vadd.f32 %v420_v37, %v341_v54  ;;  %v1679_v50 = vld [vmem:[%s2250_s4] ss:$8 sps:$4 sm:$0xff]  }
 0x49f   :  { %v508_v41 = vadd.f32 %v490_v53, %v468_v57  ;;  %v469_v42 = vmul.f32 %v454_v10, %v429_v19  ;;  %v1684_v57 = vld [vmem:[%s2250_s4 + $0x10] ss:$8 sps:$4 sm:$0xff]   ;;  %v1685_v19 = vld [vmem:[%s2250_s4 + $0x24] ss:$8 sps:$4 sm:$0xff]   ;;  %v1687_v37 = vld [vmem:[%s2250_s4 + $0x20] ss:$8 sps:$4 sm:$0xff]  }
 0x4a0   :  { %v506_v43 = vadd.f32 %v482_v46, %v466_v39  ;;  %v467_v45 = vmul.f32 %v446_v8, %v421_v40  ;;  %v565_v46 = vsel %vm88_vm0, 0, %v557_v61 }
 0x4a1   :  { %v516_v48 = vmax.f32 %v508_v41, 0.0  ;;  %v509_v49 = vadd.f32 %v494_v9, %v469_v42  ;;  %v572_v0 = vsel %vm94_vm1, %v565_v46, 0 }
 0x4a2   :  { %v514_v55 = vmax.f32 %v506_v43, 0.0  ;;  %v507_v56 = vadd.f32 %v486_v5, %v467_v45 }
 0x4a3   :  { %v517_v58 = vmax.f32 %v509_v49, 0.0  ;;  %v524_v60 = vmul.f32 %v1864_v52, %v516_v48 }
 0x4a4   :  { %v515_v59 = vmax.f32 %v507_v56, 0.0  ;;  %v522_v62 = vmul.f32 %v1864_v52, %v514_v55 }
 0x4a5   :  { %v525_v47 = vmul.f32 %v1864_v52, %v517_v58 }
 0x4a6   :  { %v523_v63 = vmul.f32 %v1864_v52, %v515_v59 }
 0x4a7   :  { %v550_v54 = vpack.c.bf16 %v525_v47, %v524_v60 }
 0x4a8   :  { %v549_v53 = vpack.c.bf16 %v523_v63, %v522_v62 }
 0x4a9   :  { %560 = vrot.lane.b32.xlu0 %v550_v54, %s1698_s19 }
 0x4aa   :  { %558 = vrot.lane.b32.xlu1 %v549_v53, %s1698_s19 }
 0x4ad   :  { %580 = vrot.lane.b32.xlu0 %v572_v0, %s1700_s23 }
 0x4ae   :  { %562 = vrot.lane.b32.xlu1 %v551_v35, %s1698_s19 }
 0x51b   :  { %v561_v1 = vpop.permute.xlu0 %560 }
 0x51c   :  { %v569_v2 = vsel %vm88_vm0, 0, %v561_v1  ;;  %v559_v3 = vpop.permute.xlu1 %558 }
 0x51d   :  { %v574_v38 = vsel %vm94_vm1, %v569_v2, 0  ;;  %v567_v4 = vsel %vm88_vm0, 0, %v559_v3 }
 0x51e   :  { %584 = vrot.lane.b32.xlu0 %v574_v38, %s1700_s23  ;;  %v573_v5 = vsel %vm94_vm1, %v567_v4, 0 }
 0x51f   :  { %582 = vrot.lane.b32.xlu1 %v573_v5, %s1700_s23  ;;  %v581_v6 = vpop.permute.xlu0 %580 }
 0x520   :  { %v563_v44 = vpop.permute.xlu1 %562  ;;  %714 = vmatpush1.bf16.msra.mxu0 %v581_v6 }
 0x521   :  { %v571_v7 = vsel %vm88_vm0, 0, %v563_v44  ;;  %715 = vmatprep.subr.bf16.mxu0 %v1701_v13 }
 0x522   :  { %588 = vrot.lane.b32.xlu0 %v572_v0, %s1699_s22  ;;  %v575_v8 = vsel %vm94_vm1, %v571_v7, 0 }
 0x523   :  { %586 = vrot.lane.b32.xlu1 %v575_v8, %s1700_s23 }
 0x526   :  { %592 = vrot.lane.b32.xlu0 %v574_v38, %s1699_s22 }
 0x527   :  { %590 = vrot.lane.b32.xlu1 %v573_v5, %s1699_s22 }
 0x52a   :  { %672 = vrot.lane.b32.xlu0 %v581_v6, %s1700_s23 }
 0x52b   :  { %594 = vrot.lane.b32.xlu1 %v575_v8, %s1699_s22 }
 0x590   :  { %v585_v9 = vpop.permute.xlu0 %584 }
 0x591   :  { %v583_v10 = vpop.permute.xlu1 %582  ;;  %676 = vrot.lane.b32.xlu0 %v585_v9, %s1700_s23 }
 0x592   :  { %674 = vrot.lane.b32.xlu1 %v583_v10, %s1700_s23  ;;  %716 = vmatpush1.bf16.msra.mxu0 %v583_v10 }
 0x593   :  { %717 = vmatprep.subr.bf16.mxu0 %v1701_v13 }
 0x594   :  { %v589_v11 = vpop.permute.xlu0 %588 }
 0x595   :  { %v587_v12 = vpop.permute.xlu1 %586  ;;  %680 = vrot.lane.b32.xlu0 %v589_v11, %s1700_s23 }
 0x596   :  { %678 = vrot.lane.b32.xlu1 %v587_v12, %s1700_s23  ;;  %718 = vmatpush1.bf16.msra.mxu0 %v585_v9 }
 0x597   :  { %719 = vmatprep.subr.bf16.mxu0 %v1701_v13 }
 0x598   :  { %v593_v20 = vpop.permute.xlu0 %592 }
 0x599   :  { %v591_v21 = vpop.permute.xlu1 %590  ;;  %684 = vrot.lane.b32.xlu0 %v593_v20, %s1700_s23 }
 0x59a   :  { %682 = vrot.lane.b32.xlu1 %v591_v21, %s1700_s23  ;;  %720 = vmatpush1.bf16.msra.mxu0 %v587_v12 }
 0x59b   :  { %721 = vmatprep.subr.bf16.mxu0 %v1701_v13 }
 0x59c   :  { %v673_v22 = vpop.permute.xlu0 %672 }
 0x59d   :  { %v595_v23 = vpop.permute.xlu1 %594  ;;  %783 = vperm.xlu0 %1632, %v1990_v25  }
 0x59e   :  { %686 = vrot.lane.b32.xlu1 %v595_v23, %s1700_s23  ;;  %722 = vmatpush1.bf16.msra.mxu0 %v673_v22 }
 0x59f   :  { %723 = vmatprep.subr.bf16.mxu0 %v1701_v13 }
 0x5a1   :  { %1633 = vset.pattern.permute.xlu0 %v1701_v13 }
 0x5a2   :  { %613 = vperm.xlu1 %1630, %v1990_v25   ;;  %608 = vperm.xlu0 %1633, %v1997_v26  }
 0x5a6   :  { %1631 = vset.pattern.permute.xlu1 %v1702_v15  ;;  %618 = vperm.xlu0 %1633, %v2006_v27  }
 0x5a7   :  { %779 = vperm.xlu1 %1631, %v1997_v26  }
 0x5aa   :  { %1637 = vset.pattern.permute.xlu0 %v1702_v15 }
 0x5ab   :  { %1634 = vset.pattern.permute.xlu1 %v1703_v18  ;;  %791 = vperm.xlu0 %1637, %v2014_v28  }
 0x5ac   :  { %799 = vperm.xlu1 %1634, %v1997_v26  }
 0x5af   :  { %1639 = vset.pattern.permute.xlu0 %v1701_v13 }
 0x5b0   :  { %803 = vperm.xlu1 %1634, %v1990_v25  }
 0x5b4   :  { %1635 = vset.pattern.permute.xlu1 %v1701_v13 }
 0x5b5   :  { %623 = vperm.xlu1 %1635, %v2014_v28  }
 0x5b9   :  { %1636 = vset.pattern.permute.xlu1 %v1702_v15 }
 0x5ba   :  { %787 = vperm.xlu1 %1636, %v2006_v27  }
 0x5be   :  { %1638 = vset.pattern.permute.xlu1 %v1703_v18 }
 0x5bf   :  { %807 = vperm.xlu1 %1638, %v2006_v27  }
 0x5c3   :  { %811 = vperm.xlu1 %1638, %v2014_v28  }
 0x5c7   :  { %1640 = vset.pattern.permute.xlu1 %v1701_v13 }
 0x603   :  { %v677_v30 = vpop.permute.xlu0 %676 }
 0x604   :  { %v675_v29 = vpop.permute.xlu1 %674 }
 0x605   :  { %724 = vmatpush1.bf16.msra.mxu0 %v675_v29 }
 0x606   :  { %725 = vmatprep.subr.bf16.mxu0 %v1701_v13 }
 0x607   :  { %v681_v35 = vpop.permute.xlu0 %680 }
 0x608   :  { %v679_v31 = vpop.permute.xlu1 %678 }
 0x609   :  { %726 = vmatpush1.bf16.msra.mxu0 %v677_v30 }
 0x60a   :  { %727 = vmatprep.subr.bf16.mxu0 %v1701_v13 }
 0x60b   :  { %v685_v14 = vpop.permute.xlu0 %684 }
 0x60c   :  { %v683_v16 = vpop.permute.xlu1 %682 }
 0x60d   :  { %728 = vmatpush1.bf16.msra.mxu0 %v679_v31 }
 0x60e   :  { %729 = vmatprep.subr.bf16.mxu0 %v1701_v13 }
 0x610   :  { %v687_v17 = vpop.permute.xlu1 %686 }
 0x611   :  { %730 = vmatpush1.bf16.msra.mxu0 %v681_v35 }
 0x612   :  { %731 = vmatprep.subr.bf16.mxu0 %v1701_v13 }
 0x615   :  { %732 = vmatpush1.bf16.msra.mxu0 %v683_v16 }
 0x616   :  { %733 = vmatprep.subr.bf16.mxu0 %v1701_v13 }
 0x619   :  { %734 = vmatpush1.bf16.msra.mxu0 %v685_v14 }
 0x61a   :  { %735 = vmatprep.subr.bf16.mxu0 %v1701_v13 }
 0x61c   :  { %v784_v49 = vpop.permute.xlu0 %783 }
 0x61d   :  { %736 = vmatpush1.bf16.msra.mxu0 %v687_v17 }
 0x620   :  { %746 = vmatmul.mubr.bf16.vlgmr.msra.gmra.mrb[8].mxu0 %v1679_v50 }
 0x621   :  { %1447 = vmatprep.mubr.msk.bf16.mxu0 %vm700_vm10, %v1682_v36  ;;  %v614_v39 = vpop.permute.xlu1 %613  ;;  %v609_v58 = vpop.permute.xlu0 %608 }
 0x625   :  { %v619_v1 = vpop.permute.xlu0 %618 }
 0x626   :  { %v780_v40 = vpop.permute.xlu1 %779 }
 0x628   :  { %754 = vmatmul.mubr.bf16.gmra.mrb[12].mxu0 %v1684_v57 }
 0x629   :  { %1448 = vmatprep.mubr.msk.bf16.mxu0 %vm700_vm10, %v1685_v19 }
 0x62a   :  { %v792_v8 = vpop.permute.xlu0 %791 }
 0x62b   :  { %v800_v41 = vpop.permute.xlu1 %799 }
 0x62f   :  { %v804_v42 = vpop.permute.xlu1 %803 }
 0x630   :  { %762 = vmatmul.mubr.bf16.gmra.mrb[16].mxu0 %v1687_v37 }
 0x634   :  { %v624_v56 = vpop.permute.xlu1 %623 }
 0x639   :  { %v788_v61 = vpop.permute.xlu1 %787 }
 0x63e   :  { %v808_v38 = vpop.permute.xlu1 %807 }
 0x642   :  { %v812_v24 = vpop.permute.xlu1 %811 }
 0x6f3   :  { %v2051_v43 = vpop.f32.mrb[8].mxu0 }
 0x6f4   :  { %v749_v45 = vpop.f32.mrb[9].mxu0 }
 0x6f5   :  { %v2053_v48 = vpop.f32.mrb[10].mxu0 }
 0x6f6   :  { %v752_v55 = vpop.f32.mrb[11].mxu0 }
 0x6fb   :  { %v755_v59 = vpop.f32.mrb[12].mxu0 }
 0x6fc   :  { %v756_v60 = vadd.f32 %v755_v59, %v609_v58  ;;  %v757_v47 = vpop.f32.mrb[13].mxu0  ;;  %v541_v58 = vld [vmem:[%s2251_s6 + $0x8] sm:$0xff]  ;;  %v540_v59 = vld [vmem:[%s2251_s6] sm:$0xff] }
 0x6fd   :  { %v758_v62 = vpop.f32.mrb[14].mxu0  ;;  %v547_v47 = vld [vmem:[%s2251_s6 + $0x38] sm:$0xff] }
 0x6fe   :  { %v794_v63 = vmul.f32 %v780_v40, %v756_v60  ;;  %v759_v54 = vadd.f32 %v758_v62, %v614_v39  ;;  %v760_v53 = vpop.f32.mrb[15].mxu0  ;;  %v1691_v60 = vld [vmem:[%s2252_s5] sm:$0xff]  }
 0x6ff   :  { %1561 = vmatprep.mubr.bf16.mxu1 %v1691_v60 }
 0x700   :  { %v814_v46 = vadd.f32 %v800_v41, %v794_v63  ;;  %v795_v0 = vmul.f32 %v784_v49, %v759_v54  ;;  %v1688_v41 = vld [vmem:[%s2250_s4 + $0x34] ss:$8 sps:$4 sm:$0xff]  }
 0x701   :  { %1449 = vmatprep.mubr.msk.bf16.mxu0 %vm700_vm10, %v1688_v41 }
 0x702   :  { %v818_v2 = vmax.f32 %v814_v46, 0.0  ;;  %v815_v3 = vadd.f32 %v804_v42, %v795_v0  ;;  %v1690_v42 = vld [vmem:[%s2250_s4 + $0x30] ss:$8 sps:$4 sm:$0xff]  }
 0x703   :  { %v763_v4 = vpop.f32.mrb[16].mxu0  ;;  %770 = vmatmul.mubr.bf16.gmra.mrb[20].mxu0 %v1690_v42 }
 0x704   :  { %v819_v5 = vmax.f32 %v815_v3, 0.0  ;;  %v764_v6 = vadd.f32 %v763_v4, %v619_v1  ;;  %v765_v44 = vpop.f32.mrb[17].mxu0  ;;  %v822_v12 = vmul.f32 %v1864_v52, %v818_v2 }
 0x705   :  { %v766_v7 = vpop.f32.mrb[18].mxu0 }
 0x706   :  { %v796_v9 = vmul.f32 %v788_v61, %v764_v6  ;;  %v767_v10 = vadd.f32 %v766_v7, %v624_v56  ;;  %v768_v11 = vpop.f32.mrb[19].mxu0  ;;  %v823_v20 = vmul.f32 %v1864_v52, %v819_v5  ;;  %v1692_v61 = vld [vmem:[%s2252_s5 + $0x8] sm:$0xff]  }
 0x708   :  { %v816_v21 = vadd.f32 %v808_v38, %v796_v9  ;;  %v797_v22 = vmul.f32 %v792_v8, %v767_v10  ;;  %v826_v23 = vpack.c.bf16 %v823_v20, %v822_v12 }
 0x70a   :  { %v820_v29 = vmax.f32 %v816_v21, 0.0  ;;  %v817_v30 = vadd.f32 %v812_v24, %v797_v22  ;;  %829 = vrot.lane.b32.xlu0 %v826_v23, %s1698_s19 }
 0x70c   :  { %v821_v31 = vmax.f32 %v817_v30, 0.0  ;;  %v824_v35 = vmul.f32 %v1864_v52, %v820_v29 }
 0x70e   :  { %v825_v16 = vmul.f32 %v1864_v52, %v821_v31 }
 0x710   :  { %v827_v14 = vpack.c.bf16 %v825_v16, %v824_v35 }
 0x712   :  { %835 = vrot.lane.b32.xlu1 %v827_v14, %s1698_s19 }
 0x77c   :  { %v830_v17 = vpop.permute.xlu0 %829 }
 0x77d   :  { %v832_v50 = vsel %vm88_vm0, 0, %v830_v17 }
 0x77e   :  { %v833_v36 = vsel %vm94_vm1, %v832_v50, 0 }
 0x77f   :  { %843 = vrot.lane.b32.xlu1 %v833_v36, %s1699_s22  ;;  %841 = vrot.lane.b32.xlu0 %v833_v36, %s1700_s23 }
 0x784   :  { %v836_v57 = vpop.permute.xlu1 %835 }
 0x785   :  { %v838_v19 = vsel %vm88_vm0, 0, %v836_v57 }
 0x786   :  { %v839_v37 = vsel %vm94_vm1, %v838_v19, 0 }
 0x787   :  { %848 = vrot.lane.b32.xlu1 %v839_v37, %s1700_s23  ;;  %846 = vrot.lane.b32.xlu0 %v839_v37, %s1705_s1 }
 0x78b   :  { %852 = vrot.lane.b32.xlu1 %v839_v37, %s1706_s21  ;;  %850 = vrot.lane.b32.xlu0 %v839_v37, %s1699_s22 }
 0x7d6   :  { %v771_v17 = vpop.f32.mrb[20].mxu0 }
 0x7d7   :  { %v773_v36 = vpop.f32.mrb[21].mxu0 }
 0x7d8   :  { %v774_v57 = vpop.f32.mrb[22].mxu0 }
 0x7f1   :  { %v844_v39 = vpop.permute.xlu1 %843  ;;  %v842_v40 = vpop.permute.xlu0 %841 }
 0x7f2   :  { %884 = vrot.lane.b32.xlu1 %v844_v39, %s1700_s23  ;;  %1545 = vmatprep.subr.bf16.mxu1 %v842_v40  ;;  %v776_v39 = vpop.f32.mrb[23].mxu0 }
 0x7f3   :  { %882 = vrot.lane.b32.xlu0 %v842_v40, %s1700_s23  ;;  %1546 = vmatpush3.bf16.msra.mxu1 %v842_v40  ;;  %v1108_v39 = vld [vmem:[%s2254_s9 + $0x10] sm:$0xff] }
 0x7f9   :  { %v2079_v45 = vpop.permute.xlu1 %848  ;;  %v847_v49 = vpop.permute.xlu0 %846 }
 0x7fa   :  { %888 = vrot.lane.b32.xlu1 %v2079_v45, %s1700_s23  ;;  %886 = vrot.lane.b32.xlu0 %v847_v49, %s1700_s23 }
 0x7fd   :  { %v853_v55 = vpop.permute.xlu1 %852  ;;  %v851_v56 = vpop.permute.xlu0 %850 }
 0x7fe   :  { %892 = vrot.lane.b32.xlu1 %v853_v55, %s1700_s23  ;;  %890 = vrot.lane.b32.xlu0 %v851_v56, %s1700_s23 }
 0x802   :  { %603 = vperm.xlu1 %1640, %v541_v58   ;;  %598 = vperm.xlu0 %1639, %v540_v59  }
 0x806   :  { %1641 = vset.pattern.permute.xlu1 %v1707_v32  ;;  %1643 = vset.pattern.permute.xlu0 %v1708_v33 }
 0x807   :  { %952 = vperm.xlu1 %1641, %v540_v59   ;;  %992 = vperm.xlu0 %1643, %v540_v59  }
 0x80b   :  { %1000 = vperm.xlu0 %1643, %v1997_v26   ;;  %1642 = vset.pattern.permute.xlu1 %v1709_v34 }
 0x80c   :  { %855 = vperm.xlu1 %1642, %v540_v59  }
 0x80f   :  { %1008 = vperm.xlu0 %1643, %v2006_v27  }
 0x810   :  { %859 = vperm.xlu1 %1642, %v541_v58  }
 0x813   :  { %1650 = vset.pattern.permute.xlu0 %v1707_v32 }
 0x814   :  { %956 = vperm.xlu0 %1650, %v541_v58   ;;  %1644 = vset.pattern.permute.xlu1 %v1708_v33 }
 0x815   :  { %996 = vperm.xlu1 %1644, %v541_v58  }
 0x818   :  { %964 = vperm.xlu0 %1650, %v1990_v25  }
 0x819   :  { %1645 = vset.pattern.permute.xlu1 %v1707_v32 }
 0x81a   :  { %960 = vperm.xlu1 %1645, %v1997_v26  }
 0x81c   :  { %972 = vperm.xlu0 %1650, %v2014_v28  }
 0x81e   :  { %1646 = vset.pattern.permute.xlu1 %v1709_v34  ;;  %v546_v34 = vld [vmem:[%s2251_s6 + $0x30] sm:$0xff] }
 0x81f   :  { %863 = vperm.xlu1 %1646, %v1997_v26  }
 0x820   :  { %980 = vperm.xlu0 %1650, %v547_v47  }
 0x823   :  { %867 = vperm.xlu1 %1646, %v1990_v25  }
 0x824   :  { %1655 = vset.pattern.permute.xlu0 %v1701_v13 }
 0x827   :  { %1647 = vset.pattern.permute.xlu1 %v1708_v33 }
 0x828   :  { %1004 = vperm.xlu1 %1647, %v1990_v25  }
 0x82c   :  { %1648 = vset.pattern.permute.xlu1 %v1707_v32 }
 0x82d   :  { %968 = vperm.xlu1 %1648, %v2006_v27  }
 0x831   :  { %1649 = vset.pattern.permute.xlu1 %v1701_v13 }
 0x832   :  { %628 = vperm.xlu1 %1649, %v546_v34  }
 0x836   :  { %633 = vperm.xlu1 %1649, %v547_v47  }
 0x83a   :  { %1651 = vset.pattern.permute.xlu1 %v1708_v33 }
 0x83b   :  { %1012 = vperm.xlu1 %1651, %v2014_v28  }
 0x83f   :  { %1652 = vset.pattern.permute.xlu1 %v1707_v32 }
 0x840   :  { %976 = vperm.xlu1 %1652, %v546_v34  }
 0x844   :  { %1653 = vset.pattern.permute.xlu1 %v1708_v33 }
 0x845   :  { %1016 = vperm.xlu1 %1653, %v546_v34  }
 0x849   :  { %1020 = vperm.xlu1 %1653, %v547_v47  }
 0x84d   :  { %1654 = vset.pattern.permute.xlu1 %v1701_v13 }
 0x864   :  { %v885_v26 = vpop.permute.xlu1 %884 }
 0x865   :  { %v883_v25 = vpop.permute.xlu0 %882 }
 0x866   :  { %1547 = vmatprep.subr.bf16.mxu1 %v883_v25 }
 0x867   :  { %1548 = vmatpush3.bf16.msra.mxu1 %v883_v25 }
 0x868   :  { %1549 = vmatprep.subr.bf16.mxu1 %v885_v26 }
 0x86b   :  { %1550 = vmatpush3.bf16.msra.mxu1 %v885_v26 }
 0x86c   :  { %v887_v27 = vpop.permute.xlu0 %886  ;;  %v889_v28 = vpop.permute.xlu1 %888 }
 0x86d   :  { %1551 = vmatprep.subr.bf16.mxu1 %v887_v27 }
 0x86f   :  { %1552 = vmatpush3.bf16.msra.mxu1 %v887_v27 }
 0x870   :  { %1553 = vmatprep.subr.bf16.mxu1 %v2079_v45  ;;  %v891_v32 = vpop.permute.xlu0 %890  ;;  %v893_v33 = vpop.permute.xlu1 %892 }
 0x873   :  { %1554 = vmatpush3.bf16.msra.mxu1 %v2079_v45 }
 0x874   :  { %1555 = vmatprep.subr.bf16.mxu1 %v889_v28 }
 0x877   :  { %1556 = vmatpush3.bf16.msra.mxu1 %v889_v28 }
 0x878   :  { %1557 = vmatprep.subr.bf16.mxu1 %v891_v32 }
 0x87b   :  { %1558 = vmatpush3.bf16.msra.mxu1 %v891_v32 }
 0x87c   :  { %1559 = vmatprep.subr.bf16.mxu1 %v893_v33 }
 0x87f   :  { %1560 = vmatpush3.bf16.msra.mxu1 %v893_v33 }
 0x881   :  { %v604_v62 = vpop.permute.xlu1 %603  ;;  %v599_v63 = vpop.permute.xlu0 %598 }
 0x882   :  { %1562 = vmatmul.mubr.bf16.vlgmr.msra.gmra.mrb[4].mxu1 %v1692_v61  ;;  %v748_v54 = vadd.f32 %v2051_v43, %v599_v63  ;;  %v751_v7 = vadd.f32 %v2053_v48, %v604_v62 }
 0x886   :  { %v953_v53 = vpop.permute.xlu1 %952  ;;  %v993_v46 = vpop.permute.xlu0 %992 }
 0x887   :  { %v983_v0 = vmul.f32 %v953_v53, %v748_v54 }
 0x889   :  { %v1023_v1 = vadd.f32 %v993_v46, %v983_v0 }
 0x88a   :  { %v2133_v2 = vpop.permute.xlu0 %1000 }
 0x88b   :  { %v1031_v3 = vmax.f32 %v1023_v1, 0.0  ;;  %v856_v38 = vpop.permute.xlu1 %855 }
 0x88d   :  { %v1039_v4 = vmul.f32 %v1864_v52, %v1031_v3 }
 0x88e   :  { %v1009_v5 = vpop.permute.xlu0 %1008 }
 0x88f   :  { %v1048_v6 = vsel %vm1047_vm11, %v1039_v4, -inf  ;;  %v860_v44 = vpop.permute.xlu1 %859  ;;  %v1073_v8 = vsel %vm1072_vm12, %v1039_v4, -inf }
 0x890   :  { %1049 = vmax.xlane.f32.xlu0 %v1048_v6 }
 0x893   :  { %v957_v43 = vpop.permute.xlu0 %956 }
 0x894   :  { %v984_v9 = vmul.f32 %v957_v43, %v751_v7  ;;  %1074 = vmax.xlane.f32.xlu0 %v1073_v8  ;;  %v997_v10 = vpop.permute.xlu1 %996 }
 0x896   :  { %v1024_v11 = vadd.f32 %v997_v10, %v984_v9 }
 0x897   :  { %v965_v42 = vpop.permute.xlu0 %964 }
 0x898   :  { %v1032_v12 = vmax.f32 %v1024_v11, 0.0 }
 0x899   :  { %v961_v23 = vpop.permute.xlu1 %960 }
 0x89a   :  { %v1040_v20 = vmul.f32 %v1864_v52, %v1032_v12 }
 0x89b   :  { %v973_v45 = vpop.permute.xlu0 %972 }
 0x89c   :  { %v1076_v21 = vsel %vm1072_vm12, %v1040_v20, -inf  ;;  %v1051_v22 = vsel %vm1047_vm11, %v1040_v20, -inf }
 0x89d   :  { %1077 = vmax.xlane.f32.xlu0 %v1076_v21  ;;  %1052 = vmax.xlane.f32.xlu1 %v1051_v22 }
 0x89e   :  { %v864_v24 = vpop.permute.xlu1 %863 }
 0x89f   :  { %v981_v49 = vpop.permute.xlu0 %980 }
 0x8a2   :  { %v868_v29 = vpop.permute.xlu1 %867 }
 0x8a7   :  { %v1005_v48 = vpop.permute.xlu1 %1004 }
 0x8ac   :  { %v969_v30 = vpop.permute.xlu1 %968 }
 0x8b1   :  { %v629_v31 = vpop.permute.xlu1 %628 }
 0x8b2   :  { %v772_v50 = vadd.f32 %v771_v17, %v629_v31 }
 0x8b5   :  { %v634_v35 = vpop.permute.xlu1 %633 }
 0x8b6   :  { %v775_v37 = vadd.f32 %v774_v57, %v634_v35  ;;  %v1693_v57 = vld [vmem:[%s2253_s7] sm:$0xff]  }
 0x8b7   :  { %1573 = vmatprep.mubr.msk.bf16.mxu1 %vm700_vm10, %v1693_v57 }
 0x8b8   :  { %v990_v11 = vmul.f32 %v981_v49, %v775_v37  ;;  %v1110_v37 = vld [vmem:[%s2254_s9 + $0x20] sm:$0xff] }
 0x8ba   :  { %v1013_v16 = vpop.permute.xlu1 %1012 }
 0x8bf   :  { %v977_v14 = vpop.permute.xlu1 %976 }
 0x8c0   :  { %v989_v19 = vmul.f32 %v977_v14, %v772_v50 }
 0x8c4   :  { %v1017_v40 = vpop.permute.xlu1 %1016 }
 0x8c5   :  { %v1029_v41 = vadd.f32 %v1017_v40, %v989_v19  ;;  %v1107_v19 = vld [vmem:[%s2254_s9 + $0x8] sm:$0xff]  ;;  %v1109_v40 = vld [vmem:[%s2254_s9 + $0x18] sm:$0xff] }
 0x8c8   :  { %v1021_v56 = vpop.permute.xlu1 %1020 }
 0x8c9   :  { %v1030_v20 = vadd.f32 %v1021_v56, %v990_v11 }
 0x91d   :  { %v1050_v55 = vpop.xlane.xlu0 %1049 }
 0x921   :  { %v1075_v58 = vpop.xlane.xlu0 %1074 }
 0x922   :  { %v1098_v47 = vsel %vm1097_vm13, %v1050_v55, %v1075_v58 }
 0x92a   :  { %v1053_v59 = vpop.xlane.xlu1 %1052  ;;  %v1078_v60 = vpop.xlane.xlu0 %1077 }
 0x92b   :  { %v1099_v34 = vsel %vm1097_vm13, %v1053_v59, %v1078_v60 }
 0x92c   :  { %v1122_v25 = vpack.c.bf16 %v1099_v34, %v1098_v47 }
 0x92e   :  { %1565 = vmatprep.subr.bf16.mxu1 %v1122_v25 }
 0x92f   :  { %1566 = vmatpush3.bf16.msra.mxu1 %v1122_v25 }
 0x955   :  { %v1563_v26 = vpop.f32.mrb[4].mxu1 }
 0x956   :  { %v945_v27 = vadd.f32 %v1563_v26, %v864_v24  ;;  %v936_v28 = vpop.f32.mrb[5].mxu1 }
 0x957   :  { %v937_v32 = vadd.f32 %v936_v28, %v856_v38  ;;  %v1564_v33 = vpop.f32.mrb[6].mxu1 }
 0x958   :  { %v987_v61 = vmul.f32 %v969_v30, %v945_v27  ;;  %v948_v62 = vadd.f32 %v1564_v33, %v868_v29  ;;  %v939_v63 = vpop.f32.mrb[7].mxu1  ;;  %v1038_v29 = vmax.f32 %v1030_v20, 0.0 }
 0x959   :  { %v985_v54 = vmul.f32 %v961_v23, %v937_v32  ;;  %v940_v53 = vadd.f32 %v939_v63, %v860_v44  ;;  %v1037_v23 = vmax.f32 %v1029_v41, 0.0  ;;  %v1111_v41 = vld [vmem:[%s2254_s9 + $0x28] sm:$0xff] }
 0x95a   :  { %v1027_v46 = vadd.f32 %v1009_v5, %v987_v61  ;;  %v988_v0 = vmul.f32 %v973_v45, %v948_v62  ;;  %v1112_v45 = vld [vmem:[%s2254_s9 + $0x30] sm:$0xff] }
 0x95b   :  { %v986_v1 = vmul.f32 %v965_v42, %v940_v53  ;;  %v1025_v4 = vadd.f32 %v2133_v2, %v985_v54  ;;  %v1045_v31 = vmul.f32 %v1864_v52, %v1037_v23  ;;  %v1113_v42 = vld [vmem:[%s2254_s9 + $0x38] sm:$0xff]  ;;  %v1694_v53 = vld [vmem:[%s2253_s7 + $0x8] sm:$0xff]  }
 0x95c   :  { %v1035_v3 = vmax.f32 %v1027_v46, 0.0  ;;  %v1028_v6 = vadd.f32 %v1013_v16, %v988_v0  ;;  %v1046_v16 = vmul.f32 %v1864_v52, %v1038_v29  ;;  %v1695_v46 = vld [vmem:[%s2253_s7 + $0x10] sm:$0xff]   ;;  %v1696_v0 = vld [vmem:[%s2253_s7 + $0x18] sm:$0xff]  }
 0x95d   :  { %v1026_v43 = vadd.f32 %v1005_v48, %v986_v1  ;;  %v1033_v9 = vmax.f32 %v1025_v4, 0.0  ;;  %v1066_v14 = vsel %vm1047_vm11, %v1045_v31, -inf  ;;  %v1091_v50 = vsel %vm1072_vm12, %v1045_v31, -inf  ;;  %v1357_v1 = vld [vmem:[%s2256_s10] sm:$0xff] }
 0x95e   :  { %v1036_v7 = vmax.f32 %v1028_v6, 0.0  ;;  %v1043_v8 = vmul.f32 %v1864_v52, %v1035_v3  ;;  %v1069_v17 = vsel %vm1047_vm11, %v1046_v16, -inf  ;;  %v1094_v36 = vsel %vm1072_vm12, %v1046_v16, -inf  ;;  %v1358_v3 = vld [vmem:[%s2256_s10 + $0x8] sm:$0x3] }
 0x95f   :  { %v1034_v12 = vmax.f32 %v1026_v43, 0.0  ;;  %v1041_v2 = vmul.f32 %v1864_v52, %v1033_v9 }
 0x960   :  { %v1060_v38 = vsel %vm1047_vm11, %v1043_v8, -inf  ;;  %v1044_v10 = vmul.f32 %v1864_v52, %v1036_v7  ;;  %v1085_v44 = vsel %vm1072_vm12, %v1043_v8, -inf }
 0x961   :  { %1061 = vmax.xlane.f32.xlu1 %v1060_v38  ;;  %v1042_v22 = vmul.f32 %v1864_v52, %v1034_v12  ;;  %v1054_v24 = vsel %vm1047_vm11, %v1041_v2, -inf  ;;  %v1079_v30 = vsel %vm1072_vm12, %v1041_v2, -inf  ;;  %v1106_v52 = vld [vmem:[%s2254_s9] sm:$0xff] }
 0x962   :  { %v1063_v5 = vsel %vm1047_vm11, %v1044_v10, -inf  ;;  %v1088_v21 = vsel %vm1072_vm12, %v1044_v10, -inf }
 0x963   :  { %1064 = vmax.xlane.f32.xlu0 %v1063_v5  ;;  %v1057_v48 = vsel %vm1047_vm11, %v1042_v22, -inf  ;;  %v1082_v35 = vsel %vm1072_vm12, %v1042_v22, -inf }
 0x965   :  { %1086 = vmax.xlane.f32.xlu1 %v1085_v44 }
 0x967   :  { %1089 = vmax.xlane.f32.xlu0 %v1088_v21 }
 0x969   :  { %1055 = vmax.xlane.f32.xlu1 %v1054_v24 }
 0x96b   :  { %1058 = vmax.xlane.f32.xlu0 %v1057_v48 }
 0x96d   :  { %1080 = vmax.xlane.f32.xlu1 %v1079_v30 }
 0x96f   :  { %1083 = vmax.xlane.f32.xlu0 %v1082_v35 }
 0x971   :  { %1067 = vmax.xlane.f32.xlu1 %v1066_v14 }
 0x973   :  { %1070 = vmax.xlane.f32.xlu0 %v1069_v17 }
 0x975   :  { %1092 = vmax.xlane.f32.xlu1 %v1091_v50 }
 0x977   :  { %1095 = vmax.xlane.f32.xlu0 %v1094_v36 }
 0x986   :  { %1128 = vperm.xlu1 %1654, %v1106_v52  }
 0x98a   :  { %1656 = vset.pattern.permute.xlu1 %v1702_v15 }
 0x98b   :  { %1264 = vperm.xlu1 %1656, %v1106_v52  }
 0x98d   :  { %1133 = vperm.xlu0 %1655, %v1107_v19  }
 0x98f   :  { %1268 = vperm.xlu1 %1656, %v1107_v19  }
 0x991   :  { %1148 = vperm.xlu0 %1655, %v1110_v37  }
 0x993   :  { %1657 = vset.pattern.permute.xlu1 %v1701_v13 }
 0x994   :  { %1138 = vperm.xlu1 %1657, %v1108_v39  }
 0x995   :  { %1661 = vset.pattern.permute.xlu0 %v1703_v18 }
 0x996   :  { %1312 = vperm.xlu0 %1661, %v1108_v39  }
 0x998   :  { %1143 = vperm.xlu1 %1657, %v1109_v40  }
 0x99a   :  { %1320 = vperm.xlu0 %1661, %v1110_v37  }
 0x99c   :  { %1658 = vset.pattern.permute.xlu1 %v1703_v18 }
 0x99d   :  { %1304 = vperm.xlu1 %1658, %v1106_v52  }
 0x99e   :  { %1665 = vset.pattern.permute.xlu0 %v1702_v15 }
 0x99f   :  { %1284 = vperm.xlu0 %1665, %v1111_v41  }
 0x9a1   :  { %1308 = vperm.xlu1 %1658, %v1107_v19  }
 0x9a3   :  { %1292 = vperm.xlu0 %1665, %v1113_v42  }
 0x9a5   :  { %1659 = vset.pattern.permute.xlu1 %v1702_v15 }
 0x9a6   :  { %1272 = vperm.xlu1 %1659, %v1108_v39  }
 0x9a7   :  { %1669 = vset.pattern.permute.xlu0 %v1701_v13 }
 0x9a8   :  { %1361 = vperm.xlu0 %1669, %v1357_v1  }
 0x9aa   :  { %1276 = vperm.xlu1 %1659, %v1109_v40  }
 0x9ae   :  { %1660 = vset.pattern.permute.xlu1 %v1701_v13 }
 0x9af   :  { %1153 = vperm.xlu1 %1660, %v1111_v41  }
 0x9b3   :  { %1662 = vset.pattern.permute.xlu1 %v1703_v18 }
 0x9b4   :  { %1316 = vperm.xlu1 %1662, %v1109_v40  }
 0x9b8   :  { %1663 = vset.pattern.permute.xlu1 %v1702_v15 }
 0x9b9   :  { %1280 = vperm.xlu1 %1663, %v1110_v37  }
 0x9bd   :  { %1664 = vset.pattern.permute.xlu1 %v1701_v13 }
 0x9be   :  { %1158 = vperm.xlu1 %1664, %v1112_v45  }
 0x9c2   :  { %1163 = vperm.xlu1 %1664, %v1113_v42  }
 0x9c6   :  { %1666 = vset.pattern.permute.xlu1 %v1703_v18 }
 0x9c7   :  { %1324 = vperm.xlu1 %1666, %v1111_v41  }
 0x9cb   :  { %1667 = vset.pattern.permute.xlu1 %v1702_v15 }
 0x9cc   :  { %1288 = vperm.xlu1 %1667, %v1112_v45  }
 0x9d0   :  { %1668 = vset.pattern.permute.xlu1 %v1703_v18 }
 0x9d1   :  { %1328 = vperm.xlu1 %1668, %v1112_v45  }
 0x9d5   :  { %1332 = vperm.xlu1 %1668, %v1113_v42  }
 0x9d9   :  { %1670 = vset.pattern.permute.xlu1 %v1701_v13 }
 0x9da   :  { %1366 = vperm.xlu1 %1670, %v1358_v3  }
 0x9ee   :  { %v1062_v49 = vpop.xlane.xlu1 %1061 }
 0x9f0   :  { %v1065_v55 = vpop.xlane.xlu0 %1064 }
 0x9f2   :  { %v1087_v56 = vpop.xlane.xlu1 %1086 }
 0x9f3   :  { %v1102_v28 = vsel %vm1097_vm13, %v1062_v49, %v1087_v56 }
 0x9f4   :  { %v1090_v58 = vpop.xlane.xlu0 %1089 }
 0x9f5   :  { %v1103_v25 = vsel %vm1097_vm13, %v1065_v55, %v1090_v58 }
 0x9f6   :  { %v1056_v59 = vpop.xlane.xlu1 %1055  ;;  %v1124_v32 = vpack.c.bf16 %v1103_v25, %v1102_v28 }
 0x9f8   :  { %v1059_v60 = vpop.xlane.xlu0 %1058 }
 0x9fa   :  { %v1081_v47 = vpop.xlane.xlu1 %1080 }
 0x9fb   :  { %v1100_v26 = vsel %vm1097_vm13, %v1056_v59, %v1081_v47 }
 0x9fc   :  { %v1084_v34 = vpop.xlane.xlu0 %1083 }
 0x9fd   :  { %v1101_v15 = vsel %vm1097_vm13, %v1059_v60, %v1084_v34 }
 0x9fe   :  { %v1123_v27 = vpack.c.bf16 %v1101_v15, %v1100_v26  ;;  %v1068_v18 = vpop.xlane.xlu1 %1067 }
 0xa00   :  { %1567 = vmatprep.subr.bf16.mxu1 %v1123_v27  ;;  %v1071_v13 = vpop.xlane.xlu0 %1070 }
 0xa01   :  { %1568 = vmatpush3.bf16.msra.mxu1 %v1123_v27 }
 0xa02   :  { %v1093_v33 = vpop.xlane.xlu1 %1092  ;;  %1569 = vmatprep.subr.bf16.mxu1 %v1124_v32 }
 0xa03   :  { %v1104_v62 = vsel %vm1097_vm13, %v1068_v18, %v1093_v33 }
 0xa04   :  { %v1096_v61 = vpop.xlane.xlu0 %1095 }
 0xa05   :  { %v1105_v63 = vsel %vm1097_vm13, %v1071_v13, %v1096_v61  ;;  %1570 = vmatpush3.bf16.msra.mxu1 %v1124_v32 }
 0xa06   :  { %v1125_v54 = vpack.c.bf16 %v1105_v63, %v1104_v62  ;;  %v1129_v4 = vpop.permute.xlu1 %1128 }
 0xa08   :  { %1571 = vmatprep.subr.bf16.mxu1 %v1125_v54 }
 0xa09   :  { %1572 = vmatpush3.bf16.msra.mxu1 %v1125_v54 }
 0xa0a   :  { %1581 = vmatprep.subr.bf16.mxu1 %v1704_v51  ;;  %v1265_v6 = vpop.permute.xlu1 %1264 }
 0xa0c   :  { %1574 = vmatmul.mubr.msk.bf16.vlgmr.msra.gmra.mrb[8].mxu1 %vm700_vm10, %v1694_v53  ;;  %v1134_v2 = vpop.permute.xlu0 %1133 }
 0xa0d   :  { %1577 = vmatprep.mubr.msk.bf16.mxu1 %vm700_vm10, %v1695_v46 }
 0xa0e   :  { %v1269_v7 = vpop.permute.xlu1 %1268 }
 0xa10   :  { %v1149_v21 = vpop.permute.xlu0 %1148 }
 0xa13   :  { %v1139_v43 = vpop.permute.xlu1 %1138 }
 0xa14   :  { %1578 = vmatmul.mubr.msk.bf16.gmra.mrb[12].mxu1 %vm700_vm10, %v1696_v0 }
 0xa15   :  { %1589 = vmatprep.mubr.msk.bf16.mxu1 %vm1710_vm14, %v1704_v51  ;;  %v1313_v23 = vpop.permute.xlu0 %1312 }
 0xa17   :  { %v1144_v8 = vpop.permute.xlu1 %1143 }
 0xa19   :  { %v1321_v29 = vpop.permute.xlu0 %1320 }
 0xa1c   :  { %v1305_v9 = vpop.permute.xlu1 %1304 }
 0xa1e   :  { %v1285_v19 = vpop.permute.xlu0 %1284 }
 0xa20   :  { %v1309_v38 = vpop.permute.xlu1 %1308 }
 0xa22   :  { %v1293_v15 = vpop.permute.xlu0 %1292 }
 0xa25   :  { %v1273_v10 = vpop.permute.xlu1 %1272 }
 0xa29   :  { %v1277_v11 = vpop.permute.xlu1 %1276 }
 0xa2e   :  { %v1154_v12 = vpop.permute.xlu1 %1153 }
 0xa33   :  { %v1317_v5 = vpop.permute.xlu1 %1316 }
 0xa38   :  { %v1281_v44 = vpop.permute.xlu1 %1280 }
 0xa3d   :  { %v1159_v20 = vpop.permute.xlu1 %1158 }
 0xa41   :  { %v1164_v22 = vpop.permute.xlu1 %1163 }
 0xa46   :  { %v1325_v24 = vpop.permute.xlu1 %1324 }
 0xa4b   :  { %v1289_v30 = vpop.permute.xlu1 %1288 }
 0xa50   :  { %v1329_v42 = vpop.permute.xlu1 %1328 }
 0xa54   :  { %v1333_v62 = vpop.permute.xlu1 %1332 }
 0xadf   :  { %v1575_v48 = vpop.f32.mrb[8].mxu1 }
 0xae0   :  { %v1241_v31 = vadd.f32 %v1575_v48, %v1139_v43  ;;  %v1232_v35 = vpop.f32.mrb[9].mxu1 }
 0xae1   :  { %v1233_v16 = vadd.f32 %v1232_v35, %v1129_v4  ;;  %v1576_v14 = vpop.f32.mrb[10].mxu1 }
 0xae2   :  { %v1297_v17 = vmul.f32 %v1273_v10, %v1241_v31  ;;  %v1244_v50 = vadd.f32 %v1576_v14, %v1144_v8  ;;  %v1235_v36 = vpop.f32.mrb[11].mxu1 }
 0xae3   :  { %v1295_v57 = vmul.f32 %v1265_v6, %v1233_v16  ;;  %v1236_v52 = vadd.f32 %v1235_v36, %v1134_v2 }
 0xae4   :  { %v1337_v37 = vadd.f32 %v1313_v23, %v1297_v17  ;;  %v1298_v39 = vmul.f32 %v1277_v11, %v1244_v50  ;;  %v1367_v11 = vpop.permute.xlu1 %1366 }
 0xae5   :  { %v1335_v40 = vadd.f32 %v1305_v9, %v1295_v57  ;;  %v1296_v41 = vmul.f32 %v1269_v7, %v1236_v52  ;;  %v1697_v9 = vld [vmem:[%s2255_s8] sm:$0x1f]  }
 0xae6   :  { %v1338_v45 = vadd.f32 %v1317_v5, %v1298_v39  ;;  %v1345_v56 = vmax.f32 %v1337_v37, 0.0 }
 0xae7   :  { %v1336_v49 = vadd.f32 %v1309_v38, %v1296_v41  ;;  %v1579_v55 = vpop.f32.mrb[12].mxu1  ;;  %v1343_v47 = vmax.f32 %v1335_v40, 0.0  ;;  %v1362_v38 = vpop.permute.xlu0 %1361 }
 0xae8   :  { %v1346_v58 = vmax.f32 %v1338_v45, 0.0  ;;  %v1257_v59 = vadd.f32 %v1579_v55, %v1159_v20  ;;  %v1248_v60 = vpop.f32.mrb[13].mxu1 }
 0xae9   :  { %v1344_v34 = vmax.f32 %v1336_v49, 0.0  ;;  %v1249_v25 = vadd.f32 %v1248_v60, %v1149_v21  ;;  %v1580_v26 = vpop.f32.mrb[14].mxu1 }
 0xaea   :  { %v1354_v27 = vpack.c.bf16 %v1346_v58, %v1345_v56  ;;  %v1301_v18 = vmul.f32 %v1289_v30, %v1257_v59  ;;  %v1260_v28 = vadd.f32 %v1580_v26, %v1164_v22  ;;  %v1251_v32 = vpop.f32.mrb[15].mxu1 }
 0xaeb   :  { %v1353_v13 = vpack.c.bf16 %v1344_v34, %v1343_v47  ;;  %v1299_v33 = vmul.f32 %v1281_v44, %v1249_v25  ;;  %v1252_v61 = vadd.f32 %v1251_v32, %v1154_v12 }
 0xaec   :  { %v1341_v63 = vadd.f32 %v1329_v42, %v1301_v18  ;;  %v1302_v54 = vmul.f32 %v1293_v15, %v1260_v28 }
 0xaed   :  { %v1339_v53 = vadd.f32 %v1321_v29, %v1299_v33  ;;  %v1300_v46 = vmul.f32 %v1285_v19, %v1252_v61  ;;  %1582 = vmatpush3.bf16.msra.mxu1 %v1353_v13 }
 0xaee   :  { %v1342_v0 = vadd.f32 %v1333_v62, %v1302_v54  ;;  %1583 = vmatprep.subr.bf16.mxu1 %v1704_v51  ;;  %v1349_v3 = vmax.f32 %v1341_v63, 0.0 }
 0xaef   :  { %v1340_v1 = vadd.f32 %v1325_v24, %v1300_v46  ;;  %v1347_v6 = vmax.f32 %v1339_v53, 0.0 }
 0xaf0   :  { %v1350_v4 = vmax.f32 %v1342_v0, 0.0 }
 0xaf1   :  { %v1348_v7 = vmax.f32 %v1340_v1, 0.0  ;;  %1584 = vmatpush3.bf16.msra.mxu1 %v1354_v27 }
 0xaf2   :  { %v1356_v43 = vpack.c.bf16 %v1350_v4, %v1349_v3  ;;  %1585 = vmatprep.subr.bf16.mxu1 %v1704_v51 }
 0xaf3   :  { %v1355_v8 = vpack.c.bf16 %v1348_v7, %v1347_v6 }
 0xaf5   :  { %1586 = vmatpush3.bf16.msra.mxu1 %v1355_v8 }
 0xaf6   :  { %1587 = vmatprep.subr.bf16.mxu1 %v1704_v51 }
 0xaf9   :  { %1588 = vmatpush3.bf16.msra.mxu1 %v1356_v43 }
 0xafc   :  { %1590 = vmatmul.mubr.msk.bf16.vlgmr.msra.gmra.mrb[16].mxu1 %vm700_vm10, %v1697_v9 }
 0xbcf   :  { %v1411_v10 = vpop.f32.mrb[16].mxu1 }
 0xbd0   :  { %v1591_v12 = vpop.f32.mrb[17].mxu1  ;;  %v1412_v5 = vadd.f32 %v1411_v10, %v1362_v38 }
 0xbd1   :  { %v1414_v44 = vpop.f32.mrb[18].mxu1 }
 0xbd2   :  { %1418 = vst.msk [vmem:[%s2257_s11] sm:$0xff] %vm88_vm0, %v1412_v5  ;;  %v1415_v51 = vadd.f32 %v1414_v44, %v1367_v11  ;;  %v1592_v2 = vpop.f32.mrb[19].mxu1 }
 0xbd4   :  { %1420 = vst.msk [vmem:[%s2257_s11 + $0x8] sm:$0x3] %vm1419_vm15, %v1415_v51 }

</bundles_post_ra>
